<compile_context>
chip_gen: v7x
topology: tpu7x:2x2x1
jax: 0.10.0
libtpu: 0.0.40
codegen_flags: <defaults>
</compile_context>

<pallas_src>
import functools

import jax
import jax.numpy as jnp
from jax import lax
from jax.experimental import pallas as pl
from jax.experimental.pallas import tpu as pltpu

CIN, COUT, KSIZE = 512, 80, 4
COUT_PAD = 128                      # pad output channels 80 -> 128 (lane-dense)
NPACK = KSIZE * COUT_PAD            # 4 kw taps packed along the MXU N dim


def _conv_silu_kernel(x_ref, w_ref, b_ref, out_ref, *, bt, h, w):
    """One grid step = B_TILE images.

    x_ref  : (bt*h*w, CIN)          bf16  flattened NHWC input rows
    w_ref  : (KSIZE, CIN, NPACK)    bf16  per-kh weights, kw packed on lanes
    b_ref  : (1, COUT_PAD)          f32   bias
    out_ref: (bt, OH*OW, COUT_PAD)  f32   sublane/lane-dense output slab
    """
    oh, ow = h - KSIZE + 1, w - KSIZE + 1

    x2d = x_ref[...]                                         # (bt*h*w, 512)
    acc = jnp.zeros((bt, oh, ow, COUT_PAD), jnp.float32)

    for kh in range(KSIZE):
        # One wide MXU matmul per kh: K=512, N=4*128 (all kw taps at once).
        r = jnp.dot(x2d, w_ref[kh], preferred_element_type=jnp.float32)
        r4 = r.reshape(bt, h, w, NPACK)                      # sublane split (W % 8 == 0 -> free)
        for kw in range(KSIZE):
            # tap (kh,kw) contributes r4[b, i+kh, j+kw, kw-group] to out[b,i,j]
            acc = acc + r4[:, kh:kh + oh, kw:kw + ow,
                           kw * COUT_PAD:(kw + 1) * COUT_PAD]

    acc = acc + b_ref[...].reshape(1, 1, 1, COUT_PAD)
    # SiLU: x * sigmoid(x). exp + approx reciprocal both run on the EUP slot;
    # approx rcp rel-err ~1e-3, well inside the bf16-matmul test tolerance.
    silu = acc * pl.reciprocal(1.0 + jnp.exp(-acc), approx=True)
    out_ref[...] = silu.reshape(bt, oh * ow, COUT_PAD).astype(out_ref.dtype)


def _pick_b_tile(n, h, w):
    """Largest divisor of n that keeps VMEM bounded, M MXU-friendly and
    (when n > 1) at least two grid steps so both v7x TensorCores get work."""
    def vmem_bytes(d):
        x_blk = d * h * w * CIN * 2                        # bf16 input block
        o_blk = d * (h - KSIZE + 1) * (w - KSIZE + 1) * COUT_PAD * 4
        w_res = KSIZE * CIN * NPACK * 2 + COUT_PAD * 4
        r_tmp = d * h * w * NPACK * 4                      # per-kh f32 result
        return 2 * (x_blk + o_blk + w_res) + 3 * r_tmp

    best = 1
    for d in range(1, n + 1):
        if n % d:
            continue
        if vmem_bytes(d) > 20 * 2 ** 20:                   # pipelining headroom
            break
        if n > 1 and n // d < 2:                           # keep grid >= 2
            break
        best = d
        if d * h * w >= 512:                               # M already big enough
            break
    return best


def head_3_forward(x_nchw, weight, bias):
    """x_nchw: (N, 512, H, W); weight: (80, 512, 4, 4) OIHW; bias: (80,).
    Returns (N, 80, H-3, W-3), matching PyTorch NCHW semantics."""
    n, c, h, w = x_nchw.shape
    assert c == CIN
    oh, ow = h - KSIZE + 1, w - KSIZE + 1

    bt = _pick_b_tile(n, h, w)
    if (bt * h * w) % 8 != 0:        # keep the x block (8,128)-legal
        bt = n
    grid = n // bt

    # --- glue (outside the hot loop; the HBM reshape below is layout-free) ---
    x_rows = jnp.transpose(x_nchw, (0, 2, 3, 1)).astype(jnp.bfloat16)
    x_rows = x_rows.reshape(n * h * w, CIN)

    # OIHW -> (KH, KW, Cin, Cout), pad Cout 80->128, pack kw along lanes:
    #   w_pack[kh, ci, kw*128 + co] = weight[co, ci, kh, kw]
    w_taps = jnp.transpose(weight, (2, 3, 1, 0))
    w_taps = jnp.pad(w_taps, ((0, 0), (0, 0), (0, 0), (0, COUT_PAD - COUT)))
    w_pack = jnp.transpose(w_taps, (0, 2, 1, 3)).reshape(KSIZE, CIN, NPACK)
    w_pack = w_pack.astype(jnp.bfloat16)
    b_row = jnp.pad(bias, (0, COUT_PAD - COUT)).reshape(1, COUT_PAD)
    b_row = b_row.astype(jnp.float32)

    kernel = functools.partial(_conv_silu_kernel, bt=bt, h=h, w=w)

    # VMEM budget from the actual tile sizes (+ margin), capped for v7x 64 MiB.
    est = (2 * (bt * h * w * CIN * 2 + bt * oh * ow * COUT_PAD * 4
                + KSIZE * CIN * NPACK * 2 + COUT_PAD * 4)
           + 3 * bt * h * w * NPACK * 4)
    vmem_limit = int(min(max(2 * est, 32 * 2 ** 20), 48 * 2 ** 20))

    out_flat = pl.pallas_call(
        kernel,
        out_shape=jax.ShapeDtypeStruct((n, oh * ow, COUT_PAD), jnp.float32),
        grid_spec=pltpu.PrefetchScalarGridSpec(
            num_scalar_prefetch=0,
            grid=(grid,),
            in_specs=[
                pl.BlockSpec((bt * h * w, CIN), lambda i: (i, 0)),
                # constant index_map: weights/bias fetched once, stay resident.
                # TODO(synk): pipeline_mode=pl.Buffered(1) would drop the spare
                # double-buffer (~2 MiB) once that path is robust everywhere.
                pl.BlockSpec((KSIZE, CIN, NPACK), lambda i: (0, 0, 0)),
                pl.BlockSpec((1, COUT_PAD), lambda i: (0, 0)),
            ],
            out_specs=pl.BlockSpec((bt, oh * ow, COUT_PAD),
                                   lambda i: (i, 0, 0)),
        ),
        compiler_params=pltpu.CompilerParams(
            dimension_semantics=("parallel",),     # megacore split on v7x
            vmem_limit_bytes=vmem_limit,
        ),
    )(x_rows, w_pack, b_row)

    # TODO(synk): for very large H, W additionally tile OH with a +3-row halo
    # so the per-step input block stays within v7x's 64 MiB VMEM.
    out = out_flat[:, :, :COUT].reshape(n, oh, ow, COUT)
    return jnp.transpose(out, (0, 3, 1, 2)).astype(x_nchw.dtype)


if __name__ == "__main__":
    key = jax.random.PRNGKey(0)
    k_x, k_w, k_b = jax.random.split(key, 3)

    # small spatial size consistent with the module (Cin/Cout fixed by __init__)
    N, H, W = 2, 8, 8
    x = jax.random.normal(k_x, (N, CIN, H, W), dtype=jnp.float32)

    # deterministic PyTorch-style (Kaiming-uniform-ish) init for conv params
    fan_in = CIN * KSIZE * KSIZE
    bound = 1.0 / (fan_in ** 0.5)
    weight = jax.random.uniform(k_w, (COUT, CIN, KSIZE, KSIZE),
                                minval=-bound, maxval=bound, dtype=jnp.float32)
    bias = jax.random.uniform(k_b, (COUT,),
                              minval=-bound, maxval=bound, dtype=jnp.float32)

    fwd = jax.jit(head_3_forward)
    out = jax.block_until_ready(fwd(x, weight, bias))

    # reference: same bf16 operands, f32 accumulation, exact sigmoid
    ref = lax.conv_general_dilated(
        x.astype(jnp.bfloat16), weight.astype(jnp.bfloat16),
        window_strides=(1, 1), padding="VALID",
        dimension_numbers=("NCHW", "OIHW", "NCHW"),
        preferred_element_type=jnp.float32)
    ref = ref + bias.reshape(1, COUT, 1, 1)
    ref = ref * jax.nn.sigmoid(ref)

    assert out.shape == (N, COUT, H - KSIZE + 1, W - KSIZE + 1), out.shape
    assert jnp.allclose(out, ref, atol=2e-2, rtol=2e-2), "mismatch vs reference"
    print("KERNEL_OK")
</pallas_src>

<mosaic_0001>
module attributes {stable_mosaic.version = 11 : i64} {
  func.func @_conv_silu_kernel(%arg0: i32, %arg1: memref<64x512xbf16, #tpu.memory_space<vmem>>, %arg2: memref<4x512x512xbf16, #tpu.memory_space<vmem>>, %arg3: memref<1x128xf32, #tpu.memory_space<vmem>>, %arg4: memref<1x25x128xf32, #tpu.memory_space<vmem>>) attributes {dimension_semantics = [#tpu.dimension_semantics<parallel>], iteration_bounds = array<i64: 2>, scalar_prefetch = 0 : i64, scratch_operands = 0 : i64, tpu.core_type = #tpu.core_type<tc>, window_params = [{transform_indices = @transform_0, window_bounds = array<i64: 64, 512>}, {pipeline_mode = #tpu.pipeline_mode<synchronous>, transform_indices = @transform_1, window_bounds = array<i64: 4, 512, 512>}, {pipeline_mode = #tpu.pipeline_mode<synchronous>, transform_indices = @transform_2, window_bounds = array<i64: 1, 128>}, {transform_indices = @transform_3, window_bounds = array<i64: 1, 25, 128>}]} {
    %c0 = arith.constant 0 : index
    %c0_0 = arith.constant 0 : index
    %0 = vector.load %arg1[%c0, %c0_0] : memref<64x512xbf16, #tpu.memory_space<vmem>>, vector<64x512xbf16>
    %cst = arith.constant 0.000000e+00 : f32
    %1 = vector.broadcast %cst : f32 to vector<1x5x5x128xf32>
    %c0_1 = arith.constant 0 : index
    %c0_2 = arith.constant 0 : index
    %c0_3 = arith.constant 0 : index
    %2 = vector.load %arg2[%c0_1, %c0_2, %c0_3] : memref<4x512x512xbf16, #tpu.memory_space<vmem>>, vector<1x512x512xbf16>
    %3 = vector.shape_cast %2 : vector<1x512x512xbf16> to vector<512x512xbf16>
    %cst_4 = arith.constant dense<0.000000e+00> : vector<64x512xf32>
    %4 = tpu.matmul %0, %3, %cst_4 {dimension_numbers = #tpu.dot_dimension_numbers<[1], [0], [0], [1], [0, 0, 1, 1], [], []>} : vector<64x512xbf16>, vector<512x512xbf16>, vector<64x512xf32> -> vector<64x512xf32>
    %5 = vector.shape_cast %4 : vector<64x512xf32> to vector<1x8x8x512xf32>
    %6 = vector.extract_strided_slice %5 {offsets = [0, 0, 0, 0], sizes = [1, 5, 5, 128], strides = [1, 1, 1, 1]} : vector<1x8x8x512xf32> to vector<1x5x5x128xf32>
    %7 = arith.addf %1, %6 : vector<1x5x5x128xf32>
    %8 = vector.extract_strided_slice %5 {offsets = [0, 0, 1, 128], sizes = [1, 5, 5, 128], strides = [1, 1, 1, 1]} : vector<1x8x8x512xf32> to vector<1x5x5x128xf32>
    %9 = arith.addf %7, %8 : vector<1x5x5x128xf32>
    %10 = vector.extract_strided_slice %5 {offsets = [0, 0, 2, 256], sizes = [1, 5, 5, 128], strides = [1, 1, 1, 1]} : vector<1x8x8x512xf32> to vector<1x5x5x128xf32>
    %11 = arith.addf %9, %10 : vector<1x5x5x128xf32>
    %12 = vector.extract_strided_slice %5 {offsets = [0, 0, 3, 384], sizes = [1, 5, 5, 128], strides = [1, 1, 1, 1]} : vector<1x8x8x512xf32> to vector<1x5x5x128xf32>
    %13 = arith.addf %11, %12 : vector<1x5x5x128xf32>
    %c1 = arith.constant 1 : index
    %c0_5 = arith.constant 0 : index
    %c0_6 = arith.constant 0 : index
    %14 = vector.load %arg2[%c1, %c0_5, %c0_6] : memref<4x512x512xbf16, #tpu.memory_space<vmem>>, vector<1x512x512xbf16>
    %15 = vector.shape_cast %14 : vector<1x512x512xbf16> to vector<512x512xbf16>
    %cst_7 = arith.constant dense<0.000000e+00> : vector<64x512xf32>
    %16 = tpu.matmul %0, %15, %cst_7 {dimension_numbers = #tpu.dot_dimension_numbers<[1], [0], [0], [1], [0, 0, 1, 1], [], []>} : vector<64x512xbf16>, vector<512x512xbf16>, vector<64x512xf32> -> vector<64x512xf32>
    %17 = vector.shape_cast %16 : vector<64x512xf32> to vector<1x8x8x512xf32>
    %18 = vector.extract_strided_slice %17 {offsets = [0, 1, 0, 0], sizes = [1, 5, 5, 128], strides = [1, 1, 1, 1]} : vector<1x8x8x512xf32> to vector<1x5x5x128xf32>
    %19 = arith.addf %13, %18 : vector<1x5x5x128xf32>
    %20 = vector.extract_strided_slice %17 {offsets = [0, 1, 1, 128], sizes = [1, 5, 5, 128], strides = [1, 1, 1, 1]} : vector<1x8x8x512xf32> to vector<1x5x5x128xf32>
    %21 = arith.addf %19, %20 : vector<1x5x5x128xf32>
    %22 = vector.extract_strided_slice %17 {offsets = [0, 1, 2, 256], sizes = [1, 5, 5, 128], strides = [1, 1, 1, 1]} : vector<1x8x8x512xf32> to vector<1x5x5x128xf32>
    %23 = arith.addf %21, %22 : vector<1x5x5x128xf32>
    %24 = vector.extract_strided_slice %17 {offsets = [0, 1, 3, 384], sizes = [1, 5, 5, 128], strides = [1, 1, 1, 1]} : vector<1x8x8x512xf32> to vector<1x5x5x128xf32>
    %25 = arith.addf %23, %24 : vector<1x5x5x128xf32>
    %c2 = arith.constant 2 : index
    %c0_8 = arith.constant 0 : index
    %c0_9 = arith.constant 0 : index
    %26 = vector.load %arg2[%c2, %c0_8, %c0_9] : memref<4x512x512xbf16, #tpu.memory_space<vmem>>, vector<1x512x512xbf16>
    %27 = vector.shape_cast %26 : vector<1x512x512xbf16> to vector<512x512xbf16>
    %cst_10 = arith.constant dense<0.000000e+00> : vector<64x512xf32>
    %28 = tpu.matmul %0, %27, %cst_10 {dimension_numbers = #tpu.dot_dimension_numbers<[1], [0], [0], [1], [0, 0, 1, 1], [], []>} : vector<64x512xbf16>, vector<512x512xbf16>, vector<64x512xf32> -> vector<64x512xf32>
    %29 = vector.shape_cast %28 : vector<64x512xf32> to vector<1x8x8x512xf32>
    %30 = vector.extract_strided_slice %29 {offsets = [0, 2, 0, 0], sizes = [1, 5, 5, 128], strides = [1, 1, 1, 1]} : vector<1x8x8x512xf32> to vector<1x5x5x128xf32>
    %31 = arith.addf %25, %30 : vector<1x5x5x128xf32>
    %32 = vector.extract_strided_slice %29 {offsets = [0, 2, 1, 128], sizes = [1, 5, 5, 128], strides = [1, 1, 1, 1]} : vector<1x8x8x512xf32> to vector<1x5x5x128xf32>
    %33 = arith.addf %31, %32 : vector<1x5x5x128xf32>
    %34 = vector.extract_strided_slice %29 {offsets = [0, 2, 2, 256], sizes = [1, 5, 5, 128], strides = [1, 1, 1, 1]} : vector<1x8x8x512xf32> to vector<1x5x5x128xf32>
    %35 = arith.addf %33, %34 : vector<1x5x5x128xf32>
    %36 = vector.extract_strided_slice %29 {offsets = [0, 2, 3, 384], sizes = [1, 5, 5, 128], strides = [1, 1, 1, 1]} : vector<1x8x8x512xf32> to vector<1x5x5x128xf32>
    %37 = arith.addf %35, %36 : vector<1x5x5x128xf32>
    %c3 = arith.constant 3 : index
    %c0_11 = arith.constant 0 : index
    %c0_12 = arith.constant 0 : index
    %38 = vector.load %arg2[%c3, %c0_11, %c0_12] : memref<4x512x512xbf16, #tpu.memory_space<vmem>>, vector<1x512x512xbf16>
    %39 = vector.shape_cast %38 : vector<1x512x512xbf16> to vector<512x512xbf16>
    %cst_13 = arith.constant dense<0.000000e+00> : vector<64x512xf32>
    %40 = tpu.matmul %0, %39, %cst_13 {dimension_numbers = #tpu.dot_dimension_numbers<[1], [0], [0], [1], [0, 0, 1, 1], [], []>} : vector<64x512xbf16>, vector<512x512xbf16>, vector<64x512xf32> -> vector<64x512xf32>
    %41 = vector.shape_cast %40 : vector<64x512xf32> to vector<1x8x8x512xf32>
    %42 = vector.extract_strided_slice %41 {offsets = [0, 3, 0, 0], sizes = [1, 5, 5, 128], strides = [1, 1, 1, 1]} : vector<1x8x8x512xf32> to vector<1x5x5x128xf32>
    %43 = arith.addf %37, %42 : vector<1x5x5x128xf32>
    %44 = vector.extract_strided_slice %41 {offsets = [0, 3, 1, 128], sizes = [1, 5, 5, 128], strides = [1, 1, 1, 1]} : vector<1x8x8x512xf32> to vector<1x5x5x128xf32>
    %45 = arith.addf %43, %44 : vector<1x5x5x128xf32>
    %46 = vector.extract_strided_slice %41 {offsets = [0, 3, 2, 256], sizes = [1, 5, 5, 128], strides = [1, 1, 1, 1]} : vector<1x8x8x512xf32> to vector<1x5x5x128xf32>
    %47 = arith.addf %45, %46 : vector<1x5x5x128xf32>
    %48 = vector.extract_strided_slice %41 {offsets = [0, 3, 3, 384], sizes = [1, 5, 5, 128], strides = [1, 1, 1, 1]} : vector<1x8x8x512xf32> to vector<1x5x5x128xf32>
    %49 = arith.addf %47, %48 : vector<1x5x5x128xf32>
    %c0_14 = arith.constant 0 : index
    %c0_15 = arith.constant 0 : index
    %50 = vector.load %arg3[%c0_14, %c0_15] : memref<1x128xf32, #tpu.memory_space<vmem>>, vector<1x128xf32>
    %51 = vector.shape_cast %50 : vector<1x128xf32> to vector<1x1x1x128xf32>
    %52 = vector.broadcast %51 : vector<1x1x1x128xf32> to vector<1x5x5x128xf32>
    %53 = arith.addf %49, %52 : vector<1x5x5x128xf32>
    %cst_16 = arith.constant 0.000000e+00 : f32
    %54 = vector.broadcast %cst_16 : f32 to vector<1x5x5x128xf32>
    %55 = arith.subf %54, %53 : vector<1x5x5x128xf32>
    %56 = math.exp %55 : vector<1x5x5x128xf32>
    %cst_17 = arith.constant 1.000000e+00 : f32
    %57 = vector.broadcast %cst_17 : f32 to vector<1x5x5x128xf32>
    %58 = arith.addf %57, %56 : vector<1x5x5x128xf32>
    %59 = tpu.reciprocal %58 {approx = true} : vector<1x5x5x128xf32> -> vector<1x5x5x128xf32>
    %60 = arith.mulf %53, %59 : vector<1x5x5x128xf32>
    %61 = vector.shape_cast %60 : vector<1x5x5x128xf32> to vector<1x25x128xf32>
    %c0_18 = arith.constant 0 : index
    %c0_19 = arith.constant 0 : index
    %c0_20 = arith.constant 0 : index
    %62 = vector.load %arg4[%c0_18, %c0_19, %c0_20] : memref<1x25x128xf32, #tpu.memory_space<vmem>>, vector<1x25x128xf32>
    tpu.vector_store %arg4[%c0_18, %c0_19, %c0_20], %61 {strides = array<i32>} : memref<1x25x128xf32, #tpu.memory_space<vmem>>, vector<1x25x128xf32>,
    return
  }
  func.func @transform_0(%arg0: i32) -> (i32, i32) {
    %c0_i32 = arith.constant 0 : i32
    %c0_i32_0 = arith.constant 0 : i32
    return %arg0, %c0_i32 : i32, i32
  }
  func.func @transform_1(%arg0: i32) -> (i32, i32, i32) {
    %c0_i32 = arith.constant 0 : i32
    %c0_i32_0 = arith.constant 0 : i32
    %c0_i32_1 = arith.constant 0 : i32
    %c0_i32_2 = arith.constant 0 : i32
    return %c0_i32, %c0_i32_0, %c0_i32_1 : i32, i32, i32
  }
  func.func @transform_2(%arg0: i32) -> (i32, i32) {
    %c0_i32 = arith.constant 0 : i32
    %c0_i32_0 = arith.constant 0 : i32
    %c0_i32_1 = arith.constant 0 : i32
    return %c0_i32, %c0_i32_0 : i32, i32
  }
  func.func @transform_3(%arg0: i32) -> (i32, i32, i32) {
    %c0_i32 = arith.constant 0 : i32
    %c0_i32_0 = arith.constant 0 : i32
    %c0_i32_1 = arith.constant 0 : i32
    return %arg0, %c0_i32, %c0_i32_0 : i32, i32, i32
  }
}

</mosaic_0001>

<bundles_post_ra>
// kernel: head_3_forward.1
= control target key start
LH: loop header
LB: loop body
LE: loop exit
PB: predicated region body
PF: predicated region fallthrough
CT: control target
= control target key end

     0   :  { %s7030_s12 = smov 0   ;;  %s8929_s0 = inlined_call_operand.vmem [shape: bf16[128,512], index: 0, kind: input, shape index: {}]   ;;  %s8930_s1 = inlined_call_operand.vmem [shape: bf16[4,512,512], index: 1, kind: input, shape index: {}]   ;;  %s8931_s2 = inlined_call_operand.vmem [shape: f32[1,128], index: 2, kind: input, shape index: {}]   ;;  %s8932_s3 = inlined_call_operand.vmem [shape: f32[2,25,128], index: 3, kind: output, shape index: {}]  }
   0x1 LB: > { %s7036_s13 = sadd.s32 4294967295, %s7007_s12   ;;  %p5149_p0 = scmp.ge.s32.totalorder %s7007_s12, 1  ;;  %s7007_s12 = sphi %s7030_s12, %s13_s12  }
   0x2   : > { %p139_p1 = scmp.lt.s32.totalorder %s7007_s12, 3 }
   0x4   : > { %p140_p2 = pnand %p5149_p0, %p139_p1 }
   0x5   : > { %v6173_v0 = vld [vmem:[%s8930_s1 + $0x4] ss:$16 sps:$4 sm:$0xff] (!%p140_p2)   ;;  %v6175_v1 = vld [vmem:[%s8930_s1 + $0xc] ss:$16 sps:$4 sm:$0xff] (!%p140_p2)   ;;  %v6177_v2 = vld [vmem:[%s8930_s1] ss:$16 sps:$4 sm:$0xff] (!%p140_p2)  }
   0x6   : > { %143 = sbr.rel (%p140_p2) target bundleno = 816 (0x330), region = 32  ;;  %1040 = vmatprep.subr.bf16.mxu0 (!%p140_p2), %v6173_v0  ;;  %v6178_v3 = vld [vmem:[%s8930_s1 + $0x8] ss:$16 sps:$4 sm:$0xff] (!%p140_p2)   ;;  %1174 = vmatprep.subr.bf16.mxu1 (!%p140_p2), %v6175_v1  ;;  %v6179_v4 = vld [vmem:[%s8930_s1 + $0x24] ss:$16 sps:$4 sm:$0xff] (!%p140_p2)   ;;  %s5150_s24 = sshll.u32 (!%p140_p2), %s7036_s13, 3 }
   0x7   : > { %1041 = vmatpush1.bf16.msra.mxu0 (!%p140_p2), %v6177_v2  ;;  %1175 = vmatpush1.bf16.msra.mxu1 (!%p140_p2), %v6178_v3  ;;  %v6181_v5 = vld [vmem:[%s8930_s1 + $0x2c] ss:$16 sps:$4 sm:$0xff] (!%p140_p2)   ;;  %v6183_v6 = vld [vmem:[%s8930_s1 + $0x20] ss:$16 sps:$4 sm:$0xff] (!%p140_p2)   ;;  %v6184_v7 = vld [vmem:[%s8930_s1 + $0x28] ss:$16 sps:$4 sm:$0xff] (!%p140_p2)  }
   0x8   : > { %1042 = vmatprep.subr.bf16.mxu0 (!%p140_p2), %v6179_v4  ;;  %1176 = vmatprep.subr.bf16.mxu1 (!%p140_p2), %v6181_v5  ;;  %v6185_v8 = vld [vmem:[%s8930_s1 + $0x44] ss:$16 sps:$4 sm:$0xff] (!%p140_p2)   ;;  %v6187_v9 = vld [vmem:[%s8930_s1 + $0x4c] ss:$16 sps:$4 sm:$0xff] (!%p140_p2)   ;;  %v6189_v10 = vld [vmem:[%s8930_s1 + $0x40] ss:$16 sps:$4 sm:$0xff] (!%p140_p2)  }
   0x9   : > { %v6190_v11 = vld [vmem:[%s8930_s1 + $0x48] ss:$16 sps:$4 sm:$0xff] (!%p140_p2)   ;;  %v6191_v12 = vld [vmem:[%s8930_s1 + $0x64] ss:$16 sps:$4 sm:$0xff] (!%p140_p2)   ;;  %v6193_v13 = vld [vmem:[%s8930_s1 + $0x6c] ss:$16 sps:$4 sm:$0xff] (!%p140_p2)  }
   0xa   : > { %v6195_v14 = vld [vmem:[%s8930_s1 + $0x60] ss:$16 sps:$4 sm:$0xff] (!%p140_p2)   ;;  %v6196_v15 = vld [vmem:[%s8930_s1 + $0x68] ss:$16 sps:$4 sm:$0xff] (!%p140_p2)   ;;  %v6197_v16 = vld [vmem:[%s8930_s1 + $0x84] ss:$16 sps:$4 sm:$0xff] (!%p140_p2)  }
   0xb   : > { %1043 = vmatpush1.bf16.msra.mxu0 (!%p140_p2), %v6183_v6  ;;  %1177 = vmatpush1.bf16.msra.mxu1 (!%p140_p2), %v6184_v7  ;;  %v6199_v17 = vld [vmem:[%s8930_s1 + $0x8c] ss:$16 sps:$4 sm:$0xff] (!%p140_p2)   ;;  %v6201_v18 = vld [vmem:[%s8930_s1 + $0x80] ss:$16 sps:$4 sm:$0xff] (!%p140_p2)   ;;  %v6202_v19 = vld [vmem:[%s8930_s1 + $0x88] ss:$16 sps:$4 sm:$0xff] (!%p140_p2)  }
   0xc   : > { %1044 = vmatprep.subr.bf16.mxu0 (!%p140_p2), %v6185_v8  ;;  %1178 = vmatprep.subr.bf16.mxu1 (!%p140_p2), %v6187_v9  ;;  %v6203_v20 = vld [vmem:[%s8930_s1 + $0xa4] ss:$16 sps:$4 sm:$0xff] (!%p140_p2)   ;;  %v6205_v21 = vld [vmem:[%s8930_s1 + $0xac] ss:$16 sps:$4 sm:$0xff] (!%p140_p2)   ;;  %v6207_v22 = vld [vmem:[%s8930_s1 + $0xa0] ss:$16 sps:$4 sm:$0xff] (!%p140_p2)  }
   0xd   : > { %v6208_v23 = vld [vmem:[%s8930_s1 + $0xa8] ss:$16 sps:$4 sm:$0xff]   ;;  %v6209_v24 = vld [vmem:[%s8930_s1 + $0xc4] ss:$16 sps:$4 sm:$0xff]   ;;  %v6211_v25 = vld [vmem:[%s8930_s1 + $0xcc] ss:$16 sps:$4 sm:$0xff]  }
   0xe   : > { %v6213_v26 = vld [vmem:[%s8930_s1 + $0xc0] ss:$16 sps:$4 sm:$0xff]   ;;  %v6214_v27 = vld [vmem:[%s8930_s1 + $0xc8] ss:$16 sps:$4 sm:$0xff]   ;;  %v6215_v28 = vld [vmem:[%s8930_s1 + $0xe4] ss:$16 sps:$4 sm:$0xff]  }
   0xf   : > { %1045 = vmatpush1.bf16.msra.mxu0 %v6189_v10  ;;  %1179 = vmatpush1.bf16.msra.mxu1 %v6190_v11  ;;  %v6217_v29 = vld [vmem:[%s8930_s1 + $0xec] ss:$16 sps:$4 sm:$0xff]   ;;  %v6219_v30 = vld [vmem:[%s8930_s1 + $0xe0] ss:$16 sps:$4 sm:$0xff]   ;;  %v6220_v31 = vld [vmem:[%s8930_s1 + $0xe8] ss:$16 sps:$4 sm:$0xff]  }
  0x10   : > { %1046 = vmatprep.subr.bf16.mxu0 %v6191_v12  ;;  %1180 = vmatprep.subr.bf16.mxu1 %v6193_v13  ;;  %v6221_v32 = vld [vmem:[%s8930_s1 + $0x104] ss:$16 sps:$4 sm:$0xff]   ;;  %v6223_v33 = vld [vmem:[%s8930_s1 + $0x10c] ss:$16 sps:$4 sm:$0xff]   ;;  %p165_p3 = scmp.lt.s32.totalorder %s5150_s24, 15  ;;  %p171_p4 = scmp.lt.s32.totalorder %s7036_s13, 1 }
  0x11   : > { %v6225_v34 = vld [vmem:[%s8930_s1 + $0x100] ss:$16 sps:$4 sm:$0xff]   ;;  %v6226_v35 = vld [vmem:[%s8930_s1 + $0x108] ss:$16 sps:$4 sm:$0xff]   ;;  %v6227_v36 = vld [vmem:[%s8930_s1 + $0x124] ss:$16 sps:$4 sm:$0xff]  }
  0x12   : > { %v6229_v37 = vld [vmem:[%s8930_s1 + $0x12c] ss:$16 sps:$4 sm:$0xff]   ;;  %s8934_s24 = smov (!%p165_p3, %s5150_s24), 15  ;;  %v6231_v38 = vld [vmem:[%s8930_s1 + $0x120] ss:$16 sps:$4 sm:$0xff]   ;;  %s8936_s13 = smov (!%p171_p4, %s7036_s13), 1 }
  0x13   : > { %1047 = vmatpush1.bf16.msra.mxu0 %v6195_v14  ;;  %1181 = vmatpush1.bf16.msra.mxu1 %v6196_v15  ;;  %v6232_v39 = vld [vmem:[%s8930_s1 + $0x128] ss:$16 sps:$4 sm:$0xff]   ;;  %v6233_v40 = vld [vmem:[%s8930_s1 + $0x144] ss:$16 sps:$4 sm:$0xff]   ;;  %v6235_v41 = vld [vmem:[%s8930_s1 + $0x14c] ss:$16 sps:$4 sm:$0xff]  }
  0x14   : > { %1048 = vmatprep.subr.bf16.mxu0 %v6197_v16  ;;  %1182 = vmatprep.subr.bf16.mxu1 %v6199_v17  ;;  %s6074_s25 = sshll.u32 %s8934_s24, 4  ;;  %v6237_v42 = vld [vmem:[%s8930_s1 + $0x140] ss:$16 sps:$4 sm:$0xff]   ;;  %v6238_v43 = vld [vmem:[%s8930_s1 + $0x148] ss:$16 sps:$4 sm:$0xff]   ;;  %s6075_s26 = sshll.u32 %s8936_s13, 5 }
  0x15   : > { %v6239_v44 = vld [vmem:[%s8930_s1 + $0x164] ss:$16 sps:$4 sm:$0xff]   ;;  %s7179_s7 = scalar_lea.vmem %s8929_s0, %s6074_s25  ;;  %v6241_v45 = vld [vmem:[%s8930_s1 + $0x16c] ss:$16 sps:$4 sm:$0xff]   ;;  %v6243_v46 = vld [vmem:[%s8930_s1 + $0x160] ss:$16 sps:$4 sm:$0xff]   ;;  %s175_s28 = scalar_lea.vmem %s8932_s3, %s6075_s26 }
  0x16   : > { %v7188_v47 = vld [vmem:[%s7179_s7 + $0x4] ss:$16 sps:$4 sm:$0xff]   ;;  %v6244_v48 = vld [vmem:[%s8930_s1 + $0x168] ss:$16 sps:$4 sm:$0xff]   ;;  %v6247_v50 = vld [vmem:[%s8930_s1 + $0x18c] ss:$16 sps:$4 sm:$0xff]  }
  0x17   : > { %1049 = vmatpush1.bf16.msra.mxu0 %v6201_v18  ;;  %1183 = vmatpush1.bf16.msra.mxu1 %v6202_v19  ;;  %v6245_v49 = vld [vmem:[%s8930_s1 + $0x184] ss:$16 sps:$4 sm:$0xff]   ;;  %v6249_v51 = vld [vmem:[%s8930_s1 + $0x180] ss:$16 sps:$4 sm:$0xff]   ;;  %v6250_v52 = vld [vmem:[%s8930_s1 + $0x188] ss:$16 sps:$4 sm:$0xff]  }
  0x18   : > { %1050 = vmatprep.subr.bf16.mxu0 %v6203_v20  ;;  %1184 = vmatprep.subr.bf16.mxu1 %v6205_v21  ;;  %v6251_v53 = vld [vmem:[%s8930_s1 + $0x1a4] ss:$16 sps:$4 sm:$0xff]   ;;  %v6253_v54 = vld [vmem:[%s8930_s1 + $0x1ac] ss:$16 sps:$4 sm:$0xff]   ;;  %v6255_v55 = vld [vmem:[%s8930_s1 + $0x1a0] ss:$16 sps:$4 sm:$0xff]  }
  0x19   : > { %1072 = vmatprep.mubr.bf16.mxu0 %v7188_v47  ;;  %1206 = vmatprep.mubr.bf16.mxu1 %v7188_v47  ;;  %v6256_v56 = vld [vmem:[%s8930_s1 + $0x1a8] ss:$16 sps:$4 sm:$0xff]   ;;  %v6257_v57 = vld [vmem:[%s8930_s1 + $0x1c4] ss:$16 sps:$4 sm:$0xff]   ;;  %v6259_v58 = vld [vmem:[%s8930_s1 + $0x1cc] ss:$16 sps:$4 sm:$0xff]  }
  0x1a   : > { %v6261_v59 = vld [vmem:[%s8930_s1 + $0x1c0] ss:$16 sps:$4 sm:$0xff]   ;;  %v6262_v60 = vld [vmem:[%s8930_s1 + $0x1c8] ss:$16 sps:$4 sm:$0xff]   ;;  %v6263_v61 = vld [vmem:[%s8930_s1 + $0x1e4] ss:$16 sps:$4 sm:$0xff]  }
  0x1b   : > { %1051 = vmatpush1.bf16.msra.mxu0 %v6207_v22  ;;  %1185 = vmatpush1.bf16.msra.mxu1 %v6208_v23  ;;  %v6265_v62 = vld [vmem:[%s8930_s1 + $0x1ec] ss:$16 sps:$4 sm:$0xff]   ;;  %v6267_v63 = vld [vmem:[%s8930_s1 + $0x1e0] ss:$16 sps:$4 sm:$0xff]   ;;  %v6268_v0 = vld [vmem:[%s8930_s1 + $0x1e8] ss:$16 sps:$4 sm:$0xff]  }
  0x1c   : > { %1052 = vmatprep.subr.bf16.mxu0 %v6209_v24  ;;  %1186 = vmatprep.subr.bf16.mxu1 %v6211_v25  ;;  %v6273_v1 = vld [vmem:[%s8930_s1 + $0x204] ss:$16 sps:$4 sm:$0xff]   ;;  %v6276_v2 = vld [vmem:[%s8930_s1 + $0x20c] ss:$16 sps:$4 sm:$0xff]   ;;  %v6271_v3 = vld [vmem:[%s8930_s1 + $0x200] ss:$16 sps:$4 sm:$0xff]  }
  0x1d   : > { %v6274_v4 = vld [vmem:[%s8930_s1 + $0x208] ss:$16 sps:$4 sm:$0xff]   ;;  %v7256_v5 = vld [vmem:[%s7179_s7] ss:$16 sps:$4 sm:$0xff]   ;;  %v6280_v6 = vld [vmem:[%s8930_s1 + $0x224] ss:$16 sps:$4 sm:$0xff]  }
  0x1e   : > { %v6283_v7 = vld [vmem:[%s8930_s1 + $0x22c] ss:$16 sps:$4 sm:$0xff]   ;;  %v6278_v8 = vld [vmem:[%s8930_s1 + $0x220] ss:$16 sps:$4 sm:$0xff]   ;;  %v6281_v9 = vld [vmem:[%s8930_s1 + $0x228] ss:$16 sps:$4 sm:$0xff]  }
  0x1f   : > { %1053 = vmatpush1.bf16.msra.mxu0 %v6213_v26  ;;  %1187 = vmatpush1.bf16.msra.mxu1 %v6214_v27  ;;  %v6286_v10 = vld [vmem:[%s8930_s1 + $0x244] ss:$16 sps:$4 sm:$0xff]   ;;  %v6289_v11 = vld [vmem:[%s8930_s1 + $0x24c] ss:$16 sps:$4 sm:$0xff]   ;;  %v6284_v12 = vld [vmem:[%s8930_s1 + $0x240] ss:$16 sps:$4 sm:$0xff]  }
  0x20   : > { %1054 = vmatprep.subr.bf16.mxu0 %v6215_v28  ;;  %1188 = vmatprep.subr.bf16.mxu1 %v6217_v29  ;;  %v6287_v13 = vld [vmem:[%s8930_s1 + $0x248] ss:$16 sps:$4 sm:$0xff]   ;;  %v7285_v14 = vld [vmem:[%s7179_s7 + $0x24] ss:$16 sps:$4 sm:$0xff]   ;;  %v7288_v15 = vld [vmem:[%s7179_s7 + $0x20] ss:$16 sps:$4 sm:$0xff]  }
  0x21   : > { %v6292_v16 = vld [vmem:[%s8930_s1 + $0x264] ss:$16 sps:$4 sm:$0xff]   ;;  %v6295_v17 = vld [vmem:[%s8930_s1 + $0x26c] ss:$16 sps:$4 sm:$0xff]   ;;  %v6290_v18 = vld [vmem:[%s8930_s1 + $0x260] ss:$16 sps:$4 sm:$0xff]  }
  0x22   : > { %v6293_v19 = vld [vmem:[%s8930_s1 + $0x268] ss:$16 sps:$4 sm:$0xff]   ;;  %v6298_v20 = vld [vmem:[%s8930_s1 + $0x284] ss:$16 sps:$4 sm:$0xff]   ;;  %v6301_v21 = vld [vmem:[%s8930_s1 + $0x28c] ss:$16 sps:$4 sm:$0xff]  }
  0x23   : > { %1055 = vmatpush1.bf16.msra.mxu0 %v6219_v30  ;;  %1189 = vmatpush1.bf16.msra.mxu1 %v6220_v31  ;;  %v6296_v22 = vld [vmem:[%s8930_s1 + $0x280] ss:$16 sps:$4 sm:$0xff]   ;;  %v7316_v23 = vld [vmem:[%s7179_s7 + $0x44] ss:$16 sps:$4 sm:$0xff]   ;;  %v6299_v24 = vld [vmem:[%s8930_s1 + $0x288] ss:$16 sps:$4 sm:$0xff]  }
  0x24   : > { %1056 = vmatprep.subr.bf16.mxu0 %v6221_v32  ;;  %1190 = vmatprep.subr.bf16.mxu1 %v6223_v33  ;;  %v7322_v25 = vld [vmem:[%s7179_s7 + $0x40] ss:$16 sps:$4 sm:$0xff]   ;;  %v6304_v26 = vld [vmem:[%s8930_s1 + $0x2a4] ss:$16 sps:$4 sm:$0xff]   ;;  %v6307_v27 = vld [vmem:[%s8930_s1 + $0x2ac] ss:$16 sps:$4 sm:$0xff]  }
  0x25   : > { %v6302_v28 = vld [vmem:[%s8930_s1 + $0x2a0] ss:$16 sps:$4 sm:$0xff]   ;;  %v6305_v29 = vld [vmem:[%s8930_s1 + $0x2a8] ss:$16 sps:$4 sm:$0xff]   ;;  %v6310_v30 = vld [vmem:[%s8930_s1 + $0x2c4] ss:$16 sps:$4 sm:$0xff]  }
  0x26   : > { %v7344_v31 = vld [vmem:[%s7179_s7 + $0x64] ss:$16 sps:$4 sm:$0xff]   ;;  %v6313_v32 = vld [vmem:[%s8930_s1 + $0x2cc] ss:$16 sps:$4 sm:$0xff]   ;;  %v6308_v33 = vld [vmem:[%s8930_s1 + $0x2c0] ss:$16 sps:$4 sm:$0xff]  }
  0x27   : > { %1057 = vmatpush1.bf16.msra.mxu0 %v6225_v34  ;;  %1191 = vmatpush1.bf16.msra.mxu1 %v6226_v35  ;;  %v6311_v34 = vld [vmem:[%s8930_s1 + $0x2c8] ss:$16 sps:$4 sm:$0xff]   ;;  %v7358_v35 = vld [vmem:[%s7179_s7 + $0x60] ss:$16 sps:$4 sm:$0xff]  }
  0x28   : > { %1058 = vmatprep.subr.bf16.mxu0 %v6227_v36  ;;  %1192 = vmatprep.subr.bf16.mxu1 %v6229_v37  ;;  %v6316_v36 = vld [vmem:[%s8930_s1 + $0x2e4] ss:$16 sps:$4 sm:$0xff]   ;;  %v6319_v37 = vld [vmem:[%s8930_s1 + $0x2ec] ss:$16 sps:$4 sm:$0xff]  }
  0x2b   : > { %1059 = vmatpush1.bf16.msra.mxu0 %v6231_v38  ;;  %1193 = vmatpush1.bf16.msra.mxu1 %v6232_v39  ;;  %v6314_v38 = vld [vmem:[%s8930_s1 + $0x2e0] ss:$16 sps:$4 sm:$0xff]   ;;  %v6317_v39 = vld [vmem:[%s8930_s1 + $0x2e8] ss:$16 sps:$4 sm:$0xff]  }
  0x2c   : > { %1060 = vmatprep.subr.bf16.mxu0 %v6233_v40  ;;  %1194 = vmatprep.subr.bf16.mxu1 %v6235_v41  ;;  %v7375_v40 = vld [vmem:[%s7179_s7 + $0xc] ss:$16 sps:$4 sm:$0xff]   ;;  %v6322_v41 = vld [vmem:[%s8930_s1 + $0x304] ss:$16 sps:$4 sm:$0xff]  }
  0x2f   : > { %1061 = vmatpush1.bf16.msra.mxu0 %v6237_v42  ;;  %1195 = vmatpush1.bf16.msra.mxu1 %v6238_v43  ;;  %v6325_v42 = vld [vmem:[%s8930_s1 + $0x30c] ss:$16 sps:$4 sm:$0xff]   ;;  %v6320_v43 = vld [vmem:[%s8930_s1 + $0x300] ss:$16 sps:$4 sm:$0xff]  }
  0x30   : > { %1062 = vmatprep.subr.bf16.mxu0 %v6239_v44  ;;  %1196 = vmatprep.subr.bf16.mxu1 %v6241_v45  ;;  %v6323_v44 = vld [vmem:[%s8930_s1 + $0x308] ss:$16 sps:$4 sm:$0xff]   ;;  %v6328_v45 = vld [vmem:[%s8930_s1 + $0x324] ss:$16 sps:$4 sm:$0xff]  }
  0x33   : > { %1063 = vmatpush1.bf16.msra.mxu0 %v6243_v46  ;;  %1197 = vmatpush1.bf16.msra.mxu1 %v6244_v48  ;;  %v6331_v46 = vld [vmem:[%s8930_s1 + $0x32c] ss:$16 sps:$4 sm:$0xff]   ;;  %v6326_v48 = vld [vmem:[%s8930_s1 + $0x320] ss:$16 sps:$4 sm:$0xff]  }
  0x34   : > { %1064 = vmatprep.subr.bf16.mxu0 %v6245_v49  ;;  %1198 = vmatprep.subr.bf16.mxu1 %v6247_v50  ;;  %v6329_v49 = vld [vmem:[%s8930_s1 + $0x328] ss:$16 sps:$4 sm:$0xff]   ;;  %v6337_v50 = vld [vmem:[%s8930_s1 + $0x344] ss:$16 sps:$4 sm:$0xff]  }
  0x37   : > { %1065 = vmatpush1.bf16.msra.mxu0 %v6249_v51  ;;  %1199 = vmatpush1.bf16.msra.mxu1 %v6250_v52  ;;  %v6340_v51 = vld [vmem:[%s8930_s1 + $0x34c] ss:$16 sps:$4 sm:$0xff]   ;;  %v6335_v52 = vld [vmem:[%s8930_s1 + $0x340] ss:$16 sps:$4 sm:$0xff]  }
  0x38   : > { %1066 = vmatprep.subr.bf16.mxu0 %v6251_v53  ;;  %1200 = vmatprep.subr.bf16.mxu1 %v6253_v54  ;;  %v6338_v53 = vld [vmem:[%s8930_s1 + $0x348] ss:$16 sps:$4 sm:$0xff]   ;;  %v6343_v54 = vld [vmem:[%s8930_s1 + $0x364] ss:$16 sps:$4 sm:$0xff]  }
  0x3b   : > { %1067 = vmatpush1.bf16.msra.mxu0 %v6255_v55  ;;  %1201 = vmatpush1.bf16.msra.mxu1 %v6256_v56  ;;  %v6346_v55 = vld [vmem:[%s8930_s1 + $0x36c] ss:$16 sps:$4 sm:$0xff]   ;;  %v6341_v56 = vld [vmem:[%s8930_s1 + $0x360] ss:$16 sps:$4 sm:$0xff]  }
  0x3c   : > { %1068 = vmatprep.subr.bf16.mxu0 %v6257_v57  ;;  %1202 = vmatprep.subr.bf16.mxu1 %v6259_v58  ;;  %v6344_v57 = vld [vmem:[%s8930_s1 + $0x368] ss:$16 sps:$4 sm:$0xff]   ;;  %v6352_v58 = vld [vmem:[%s8930_s1 + $0x384] ss:$16 sps:$4 sm:$0xff]  }
  0x3f   : > { %1069 = vmatpush1.bf16.msra.mxu0 %v6261_v59  ;;  %1203 = vmatpush1.bf16.msra.mxu1 %v6262_v60  ;;  %v6355_v59 = vld [vmem:[%s8930_s1 + $0x38c] ss:$16 sps:$4 sm:$0xff]   ;;  %v6350_v60 = vld [vmem:[%s8930_s1 + $0x380] ss:$16 sps:$4 sm:$0xff]  }
  0x40   : > { %1070 = vmatprep.subr.bf16.mxu0 %v6263_v61  ;;  %1204 = vmatprep.subr.bf16.mxu1 %v6265_v62  ;;  %v6353_v61 = vld [vmem:[%s8930_s1 + $0x388] ss:$16 sps:$4 sm:$0xff]   ;;  %v6358_v62 = vld [vmem:[%s8930_s1 + $0x3a4] ss:$16 sps:$4 sm:$0xff]  }
  0x43   : > { %1071 = vmatpush1.bf16.msra.mxu0 %v6267_v63  ;;  %1205 = vmatpush1.bf16.msra.mxu1 %v6268_v0  ;;  %v6361_v63 = vld [vmem:[%s8930_s1 + $0x3ac] ss:$16 sps:$4 sm:$0xff]   ;;  %v6356_v0 = vld [vmem:[%s8930_s1 + $0x3a0] ss:$16 sps:$4 sm:$0xff]  }
  0x44   : > { %1107 = vmatprep.subr.bf16.mxu0 %v6273_v1  ;;  %1241 = vmatprep.subr.bf16.mxu1 %v6276_v2  ;;  %v6359_v1 = vld [vmem:[%s8930_s1 + $0x3a8] ss:$16 sps:$4 sm:$0xff]   ;;  %v6367_v2 = vld [vmem:[%s8930_s1 + $0x3c4] ss:$16 sps:$4 sm:$0xff]  }
  0x46   : > { %1073 = vmatmul.mubr.bf16.vlgmr.msra.gmra.mrb[0].mxu0 %v7256_v5  ;;  %1207 = vmatmul.mubr.bf16.vlgmr.msra.gmra.mrb[0].mxu1 %v7256_v5 }
  0x47   : > { %1108 = vmatpush1.bf16.msra.mxu0 %v6271_v3  ;;  %1242 = vmatpush1.bf16.msra.mxu1 %v6274_v4  ;;  %v6370_v3 = vld [vmem:[%s8930_s1 + $0x3cc] ss:$16 sps:$4 sm:$0xff]   ;;  %v6365_v4 = vld [vmem:[%s8930_s1 + $0x3c0] ss:$16 sps:$4 sm:$0xff]  }
  0x48   : > { %1109 = vmatprep.subr.bf16.mxu0 %v6280_v6  ;;  %1243 = vmatprep.subr.bf16.mxu1 %v6283_v7  ;;  %v6368_v6 = vld [vmem:[%s8930_s1 + $0x3c8] ss:$16 sps:$4 sm:$0xff]   ;;  %v6373_v7 = vld [vmem:[%s8930_s1 + $0x3e4] ss:$16 sps:$4 sm:$0xff]  }
  0x49   : > { %1082 = vmatprep.mubr.bf16.mxu0 %v7285_v14  ;;  %1216 = vmatprep.mubr.bf16.mxu1 %v7285_v14 }
  0x4b   : > { %1110 = vmatpush1.bf16.msra.mxu0 %v6278_v8  ;;  %1244 = vmatpush1.bf16.msra.mxu1 %v6281_v9  ;;  %v6376_v8 = vld [vmem:[%s8930_s1 + $0x3ec] ss:$16 sps:$4 sm:$0xff]   ;;  %v6371_v9 = vld [vmem:[%s8930_s1 + $0x3e0] ss:$16 sps:$4 sm:$0xff]  }
  0x4c   : > { %1111 = vmatprep.subr.bf16.mxu0 %v6286_v10  ;;  %1245 = vmatprep.subr.bf16.mxu1 %v6289_v11  ;;  %v6374_v10 = vld [vmem:[%s8930_s1 + $0x3e8] ss:$16 sps:$4 sm:$0xff]   ;;  %v6382_v11 = vld [vmem:[%s8930_s1 + $0x404] ss:$16 sps:$4 sm:$0xff]  }
  0x4e   : > { %1083 = vmatmul.mubr.bf16.gmra.mrb[4].mxu0 %v7288_v15  ;;  %1217 = vmatmul.mubr.bf16.gmra.mrb[4].mxu1 %v7288_v15 }
  0x4f   : > { %1112 = vmatpush1.bf16.msra.mxu0 %v6284_v12  ;;  %1246 = vmatpush1.bf16.msra.mxu1 %v6287_v13  ;;  %v6385_v12 = vld [vmem:[%s8930_s1 + $0x40c] ss:$16 sps:$4 sm:$0xff]   ;;  %v7482_v13 = vld [vmem:[%s7179_s7 + $0x8] ss:$16 sps:$4 sm:$0xff]  }
  0x50   : > { %1113 = vmatprep.subr.bf16.mxu0 %v6292_v16  ;;  %1247 = vmatprep.subr.bf16.mxu1 %v6295_v17  ;;  %v6380_v16 = vld [vmem:[%s8930_s1 + $0x400] ss:$16 sps:$4 sm:$0xff]   ;;  %v6383_v17 = vld [vmem:[%s8930_s1 + $0x408] ss:$16 sps:$4 sm:$0xff]  }
  0x51   : > { %1092 = vmatprep.mubr.bf16.mxu0 %v7316_v23  ;;  %1226 = vmatprep.mubr.bf16.mxu1 %v7316_v23 }
  0x53   : > { %1114 = vmatpush1.bf16.msra.mxu0 %v6290_v18  ;;  %1248 = vmatpush1.bf16.msra.mxu1 %v6293_v19  ;;  %v6388_v18 = vld [vmem:[%s8930_s1 + $0x424] ss:$16 sps:$4 sm:$0xff]   ;;  %v6391_v19 = vld [vmem:[%s8930_s1 + $0x42c] ss:$16 sps:$4 sm:$0xff]  }
  0x54   : > { %1115 = vmatprep.subr.bf16.mxu0 %v6298_v20  ;;  %1249 = vmatprep.subr.bf16.mxu1 %v6301_v21  ;;  %v7497_v20 = vld [vmem:[%s7179_s7 + $0x2c] ss:$16 sps:$4 sm:$0xff]   ;;  %v6386_v21 = vld [vmem:[%s8930_s1 + $0x420] ss:$16 sps:$4 sm:$0xff]  }
  0x56   : > { %1093 = vmatmul.mubr.bf16.gmra.mrb[8].mxu0 %v7322_v25  ;;  %1227 = vmatmul.mubr.bf16.gmra.mrb[8].mxu1 %v7322_v25 }
  0x57   : > { %1116 = vmatpush1.bf16.msra.mxu0 %v6296_v22  ;;  %1250 = vmatpush1.bf16.msra.mxu1 %v6299_v24  ;;  %v6389_v22 = vld [vmem:[%s8930_s1 + $0x428] ss:$16 sps:$4 sm:$0xff]   ;;  %v6397_v24 = vld [vmem:[%s8930_s1 + $0x444] ss:$16 sps:$4 sm:$0xff]  }
  0x58   : > { %1117 = vmatprep.subr.bf16.mxu0 %v6304_v26  ;;  %1251 = vmatprep.subr.bf16.mxu1 %v6307_v27  ;;  %v6400_v26 = vld [vmem:[%s8930_s1 + $0x44c] ss:$16 sps:$4 sm:$0xff]   ;;  %v7516_v27 = vld [vmem:[%s7179_s7 + $0x28] ss:$16 sps:$4 sm:$0xff]  }
  0x59   : > { %1100 = vmatprep.mubr.bf16.mxu0 %v7344_v31  ;;  %1234 = vmatprep.mubr.bf16.mxu1 %v7344_v31 }
  0x5b   : > { %1118 = vmatpush1.bf16.msra.mxu0 %v6302_v28  ;;  %1252 = vmatpush1.bf16.msra.mxu1 %v6305_v29  ;;  %v6395_v28 = vld [vmem:[%s8930_s1 + $0x440] ss:$16 sps:$4 sm:$0xff]   ;;  %v6398_v29 = vld [vmem:[%s8930_s1 + $0x448] ss:$16 sps:$4 sm:$0xff]  }
  0x5c   : > { %1119 = vmatprep.subr.bf16.mxu0 %v6310_v30  ;;  %1253 = vmatprep.subr.bf16.mxu1 %v6313_v32  ;;  %v6403_v30 = vld [vmem:[%s8930_s1 + $0x464] ss:$16 sps:$4 sm:$0xff]   ;;  %v6406_v32 = vld [vmem:[%s8930_s1 + $0x46c] ss:$16 sps:$4 sm:$0xff]  }
  0x5e   : > { %1101 = vmatmul.mubr.bf16.gmra.mrb[12].mxu0 %v7358_v35  ;;  %1235 = vmatmul.mubr.bf16.gmra.mrb[12].mxu1 %v7358_v35 }
  0x5f   : > { %1120 = vmatpush1.bf16.msra.mxu0 %v6308_v33  ;;  %1254 = vmatpush1.bf16.msra.mxu1 %v6311_v34  ;;  %v7531_v33 = vld [vmem:[%s7179_s7 + $0x4c] ss:$16 sps:$4 sm:$0xff]   ;;  %v6401_v34 = vld [vmem:[%s8930_s1 + $0x460] ss:$16 sps:$4 sm:$0xff]  }
  0x60   : > { %1121 = vmatprep.subr.bf16.mxu0 %v6316_v36  ;;  %1255 = vmatprep.subr.bf16.mxu1 %v6319_v37  ;;  %v6404_v36 = vld [vmem:[%s8930_s1 + $0x468] ss:$16 sps:$4 sm:$0xff]   ;;  %v6412_v37 = vld [vmem:[%s8930_s1 + $0x484] ss:$16 sps:$4 sm:$0xff]  }
  0x61   : > { %1139 = vmatprep.mubr.bf16.mxu0 %v7375_v40  ;;  %1273 = vmatprep.mubr.bf16.mxu1 %v7375_v40 }
  0x63   : > { %1122 = vmatpush1.bf16.msra.mxu0 %v6314_v38  ;;  %1256 = vmatpush1.bf16.msra.mxu1 %v6317_v39  ;;  %v6415_v38 = vld [vmem:[%s8930_s1 + $0x48c] ss:$16 sps:$4 sm:$0xff]   ;;  %v7550_v39 = vld [vmem:[%s7179_s7 + $0x48] ss:$16 sps:$4 sm:$0xff]  }
  0x64   : > { %1123 = vmatprep.subr.bf16.mxu0 %v6322_v41  ;;  %1257 = vmatprep.subr.bf16.mxu1 %v6325_v42  ;;  %v6410_v41 = vld [vmem:[%s8930_s1 + $0x480] ss:$16 sps:$4 sm:$0xff]   ;;  %v6413_v42 = vld [vmem:[%s8930_s1 + $0x488] ss:$16 sps:$4 sm:$0xff]  }
  0x67   : > { %1124 = vmatpush1.bf16.msra.mxu0 %v6320_v43  ;;  %1258 = vmatpush1.bf16.msra.mxu1 %v6323_v44  ;;  %v6418_v43 = vld [vmem:[%s8930_s1 + $0x4a4] ss:$16 sps:$4 sm:$0xff]   ;;  %v6421_v44 = vld [vmem:[%s8930_s1 + $0x4ac] ss:$16 sps:$4 sm:$0xff]  }
  0x68   : > { %1125 = vmatprep.subr.bf16.mxu0 %v6328_v45  ;;  %1259 = vmatprep.subr.bf16.mxu1 %v6331_v46  ;;  %v7565_v45 = vld [vmem:[%s7179_s7 + $0x6c] ss:$16 sps:$4 sm:$0xff]   ;;  %v6416_v46 = vld [vmem:[%s8930_s1 + $0x4a0] ss:$16 sps:$4 sm:$0xff]  }
  0x6b   : > { %1126 = vmatpush1.bf16.msra.mxu0 %v6326_v48  ;;  %1260 = vmatpush1.bf16.msra.mxu1 %v6329_v49  ;;  %v6419_v48 = vld [vmem:[%s8930_s1 + $0x4a8] ss:$16 sps:$4 sm:$0xff]   ;;  %v6424_v49 = vld [vmem:[%s8930_s1 + $0x4c4] ss:$16 sps:$4 sm:$0xff]  }
  0x6c   : > { %1127 = vmatprep.subr.bf16.mxu0 %v6337_v50  ;;  %1261 = vmatprep.subr.bf16.mxu1 %v6340_v51  ;;  %v6427_v50 = vld [vmem:[%s8930_s1 + $0x4cc] ss:$16 sps:$4 sm:$0xff]   ;;  %v6422_v51 = vld [vmem:[%s8930_s1 + $0x4c0] ss:$16 sps:$4 sm:$0xff]  }
  0x6f   : > { %1128 = vmatpush1.bf16.msra.mxu0 %v6335_v52  ;;  %1262 = vmatpush1.bf16.msra.mxu1 %v6338_v53  ;;  %v6425_v52 = vld [vmem:[%s8930_s1 + $0x4c8] ss:$16 sps:$4 sm:$0xff]  }
  0x70   : > { %1129 = vmatprep.subr.bf16.mxu0 %v6343_v54  ;;  %1263 = vmatprep.subr.bf16.mxu1 %v6346_v55  ;;  %v7590_v53 = vld [vmem:[%s7179_s7 + $0x68] ss:$16 sps:$4 sm:$0xff]   ;;  %v6430_v54 = vld [vmem:[%s8930_s1 + $0x4e4] ss:$16 sps:$4 sm:$0xff]   ;;  %v6433_v55 = vld [vmem:[%s8930_s1 + $0x4ec] ss:$16 sps:$4 sm:$0xff]  }
  0x73   : > { %1130 = vmatpush1.bf16.msra.mxu0 %v6341_v56  ;;  %1264 = vmatpush1.bf16.msra.mxu1 %v6344_v57  ;;  %v6428_v56 = vld [vmem:[%s8930_s1 + $0x4e0] ss:$16 sps:$4 sm:$0xff]   ;;  %v6431_v57 = vld [vmem:[%s8930_s1 + $0x4e8] ss:$16 sps:$4 sm:$0xff]  }
  0x74   : > { %1131 = vmatprep.subr.bf16.mxu0 %v6352_v58  ;;  %1265 = vmatprep.subr.bf16.mxu1 %v6355_v59  ;;  %v6436_v58 = vld [vmem:[%s8930_s1 + $0x504] ss:$16 sps:$4 sm:$0xff]   ;;  %v6439_v59 = vld [vmem:[%s8930_s1 + $0x50c] ss:$16 sps:$4 sm:$0xff]  }
  0x77   : > { %1132 = vmatpush1.bf16.msra.mxu0 %v6350_v60  ;;  %1266 = vmatpush1.bf16.msra.mxu1 %v6353_v61  ;;  %v6434_v60 = vld [vmem:[%s8930_s1 + $0x500] ss:$16 sps:$4 sm:$0xff]   ;;  %v6437_v61 = vld [vmem:[%s8930_s1 + $0x508] ss:$16 sps:$4 sm:$0xff]  }
  0x78   : > { %1133 = vmatprep.subr.bf16.mxu0 %v6358_v62  ;;  %1267 = vmatprep.subr.bf16.mxu1 %v6361_v63  ;;  %v6442_v62 = vld [vmem:[%s8930_s1 + $0x524] ss:$16 sps:$4 sm:$0xff]   ;;  %v6440_v63 = vld [vmem:[%s8930_s1 + $0x520] ss:$16 sps:$4 sm:$0xff]  }
  0x7b   : > { %1134 = vmatpush1.bf16.msra.mxu0 %v6356_v0  ;;  %1268 = vmatpush1.bf16.msra.mxu1 %v6359_v1  ;;  %v6443_v0 = vld [vmem:[%s8930_s1 + $0x528] ss:$16 sps:$4 sm:$0xff]   ;;  %v6448_v1 = vld [vmem:[%s8930_s1 + $0x544] ss:$16 sps:$4 sm:$0xff]  }
  0x7c   : > { %1135 = vmatprep.subr.bf16.mxu0 %v6367_v2  ;;  %1269 = vmatprep.subr.bf16.mxu1 %v6370_v3  ;;  %v6451_v2 = vld [vmem:[%s8930_s1 + $0x54c] ss:$16 sps:$4 sm:$0xff]   ;;  %v6446_v3 = vld [vmem:[%s8930_s1 + $0x540] ss:$16 sps:$4 sm:$0xff]  }
  0x7f   : > { %1136 = vmatpush1.bf16.msra.mxu0 %v6365_v4  ;;  %1270 = vmatpush1.bf16.msra.mxu1 %v6368_v6  ;;  %v6449_v4 = vld [vmem:[%s8930_s1 + $0x548] ss:$16 sps:$4 sm:$0xff]   ;;  %v6454_v6 = vld [vmem:[%s8930_s1 + $0x564] ss:$16 sps:$4 sm:$0xff]  }
  0x80   : > { %1137 = vmatprep.subr.bf16.mxu0 %v6373_v7  ;;  %1271 = vmatprep.subr.bf16.mxu1 %v6376_v8  ;;  %v6457_v7 = vld [vmem:[%s8930_s1 + $0x56c] ss:$16 sps:$4 sm:$0xff]   ;;  %v6452_v8 = vld [vmem:[%s8930_s1 + $0x560] ss:$16 sps:$4 sm:$0xff]  }
  0x83   : > { %1138 = vmatpush1.bf16.msra.mxu0 %v6371_v9  ;;  %1272 = vmatpush1.bf16.msra.mxu1 %v6374_v10  ;;  %v6455_v9 = vld [vmem:[%s8930_s1 + $0x568] ss:$16 sps:$4 sm:$0xff]   ;;  %v6460_v10 = vld [vmem:[%s8930_s1 + $0x584] ss:$16 sps:$4 sm:$0xff]  }
  0x84   : > { %2142 = vmatprep.subr.bf16.mxu0 %v6382_v11  ;;  %2276 = vmatprep.subr.bf16.mxu1 %v6385_v12  ;;  %v6463_v11 = vld [vmem:[%s8930_s1 + $0x58c] ss:$16 sps:$4 sm:$0xff]   ;;  %v6458_v12 = vld [vmem:[%s8930_s1 + $0x580] ss:$16 sps:$4 sm:$0xff]  }
  0x86   : > { %1140 = vmatmul.mubr.bf16.vlgmr.msra.gmra.mrb[0].mxu0 %v7482_v13  ;;  %1274 = vmatmul.mubr.bf16.vlgmr.msra.gmra.mrb[0].mxu1 %v7482_v13 }
  0x87   : > { %2143 = vmatpush1.bf16.msra.mxu0 %v6380_v16  ;;  %2277 = vmatpush1.bf16.msra.mxu1 %v6383_v17  ;;  %v6461_v16 = vld [vmem:[%s8930_s1 + $0x588] ss:$16 sps:$4 sm:$0xff]   ;;  %v6466_v17 = vld [vmem:[%s8930_s1 + $0x5a4] ss:$16 sps:$4 sm:$0xff]  }
  0x88   : > { %2144 = vmatprep.subr.bf16.mxu0 %v6388_v18  ;;  %2278 = vmatprep.subr.bf16.mxu1 %v6391_v19  ;;  %v6469_v18 = vld [vmem:[%s8930_s1 + $0x5ac] ss:$16 sps:$4 sm:$0xff]   ;;  %v6464_v19 = vld [vmem:[%s8930_s1 + $0x5a0] ss:$16 sps:$4 sm:$0xff]  }
  0x89   : > { %1149 = vmatprep.mubr.bf16.mxu0 %v7497_v20  ;;  %1283 = vmatprep.mubr.bf16.mxu1 %v7497_v20 }
  0x8b   : > { %2145 = vmatpush1.bf16.msra.mxu0 %v6386_v21  ;;  %2279 = vmatpush1.bf16.msra.mxu1 %v6389_v22  ;;  %v6467_v21 = vld [vmem:[%s8930_s1 + $0x5a8] ss:$16 sps:$4 sm:$0xff]   ;;  %v6475_v22 = vld [vmem:[%s8930_s1 + $0x5c4] ss:$16 sps:$4 sm:$0xff]  }
  0x8c   : > { %2146 = vmatprep.subr.bf16.mxu0 %v6397_v24  ;;  %2280 = vmatprep.subr.bf16.mxu1 %v6400_v26  ;;  %v6478_v24 = vld [vmem:[%s8930_s1 + $0x5cc] ss:$16 sps:$4 sm:$0xff]   ;;  %v6473_v26 = vld [vmem:[%s8930_s1 + $0x5c0] ss:$16 sps:$4 sm:$0xff]  }
  0x8e   : > { %1150 = vmatmul.mubr.bf16.gmra.mrb[4].mxu0 %v7516_v27  ;;  %1284 = vmatmul.mubr.bf16.gmra.mrb[4].mxu1 %v7516_v27 }
  0x8f   : > { %2147 = vmatpush1.bf16.msra.mxu0 %v6395_v28  ;;  %2281 = vmatpush1.bf16.msra.mxu1 %v6398_v29  ;;  %v6476_v28 = vld [vmem:[%s8930_s1 + $0x5c8] ss:$16 sps:$4 sm:$0xff]   ;;  %v6481_v29 = vld [vmem:[%s8930_s1 + $0x5e4] ss:$16 sps:$4 sm:$0xff]  }
  0x90   : > { %2148 = vmatprep.subr.bf16.mxu0 %v6403_v30  ;;  %2282 = vmatprep.subr.bf16.mxu1 %v6406_v32  ;;  %v6484_v30 = vld [vmem:[%s8930_s1 + $0x5ec] ss:$16 sps:$4 sm:$0xff]   ;;  %v6479_v32 = vld [vmem:[%s8930_s1 + $0x5e0] ss:$16 sps:$4 sm:$0xff]  }
  0x91   : > { %1159 = vmatprep.mubr.bf16.mxu0 %v7531_v33  ;;  %1293 = vmatprep.mubr.bf16.mxu1 %v7531_v33 }
  0x93   : > { %2149 = vmatpush1.bf16.msra.mxu0 %v6401_v34  ;;  %2283 = vmatpush1.bf16.msra.mxu1 %v6404_v36  ;;  %v6482_v34 = vld [vmem:[%s8930_s1 + $0x5e8] ss:$16 sps:$4 sm:$0xff]   ;;  %v6487_v36 = vld [vmem:[%s8930_s1 + $0x604] ss:$16 sps:$4 sm:$0xff]  }
  0x94   : > { %2150 = vmatprep.subr.bf16.mxu0 %v6412_v37  ;;  %2284 = vmatprep.subr.bf16.mxu1 %v6415_v38  ;;  %v6490_v37 = vld [vmem:[%s8930_s1 + $0x60c] ss:$16 sps:$4 sm:$0xff]   ;;  %v6485_v38 = vld [vmem:[%s8930_s1 + $0x600] ss:$16 sps:$4 sm:$0xff]  }
  0x96   : > { %1160 = vmatmul.mubr.bf16.gmra.mrb[16].mxu0 %v7550_v39  ;;  %1294 = vmatmul.mubr.bf16.gmra.mrb[8].mxu1 %v7550_v39 }
  0x97   : > { %2151 = vmatpush1.bf16.msra.mxu0 %v6410_v41  ;;  %2285 = vmatpush1.bf16.msra.mxu1 %v6413_v42  ;;  %v6488_v41 = vld [vmem:[%s8930_s1 + $0x608] ss:$16 sps:$4 sm:$0xff]   ;;  %v6493_v42 = vld [vmem:[%s8930_s1 + $0x624] ss:$16 sps:$4 sm:$0xff]  }
  0x98   : > { %2152 = vmatprep.subr.bf16.mxu0 %v6418_v43  ;;  %2286 = vmatprep.subr.bf16.mxu1 %v6421_v44  ;;  %v6496_v43 = vld [vmem:[%s8930_s1 + $0x62c] ss:$16 sps:$4 sm:$0xff]   ;;  %v6491_v44 = vld [vmem:[%s8930_s1 + $0x620] ss:$16 sps:$4 sm:$0xff]  }
  0x99   : > { %1167 = vmatprep.mubr.bf16.mxu0 %v7565_v45  ;;  %1301 = vmatprep.mubr.bf16.mxu1 %v7565_v45 }
  0x9b   : > { %2153 = vmatpush1.bf16.msra.mxu0 %v6416_v46  ;;  %2287 = vmatpush1.bf16.msra.mxu1 %v6419_v48  ;;  %v6494_v46 = vld [vmem:[%s8930_s1 + $0x628] ss:$16 sps:$4 sm:$0xff]   ;;  %v6499_v48 = vld [vmem:[%s8930_s1 + $0x644] ss:$16 sps:$4 sm:$0xff]  }
  0x9c   : > { %2154 = vmatprep.subr.bf16.mxu0 %v6424_v49  ;;  %2288 = vmatprep.subr.bf16.mxu1 %v6427_v50  ;;  %v6497_v49 = vld [vmem:[%s8930_s1 + $0x640] ss:$16 sps:$4 sm:$0xff]   ;;  %v6500_v50 = vld [vmem:[%s8930_s1 + $0x648] ss:$16 sps:$4 sm:$0xff]  }
  0x9e   : > { %1168 = vmatmul.mubr.bf16.gmra.mrb[20].mxu0 %v7590_v53  ;;  %1302 = vmatmul.mubr.bf16.gmra.mrb[16].mxu1 %v7590_v53 }
  0x9f   : > { %2155 = vmatpush1.bf16.msra.mxu0 %v6422_v51  ;;  %2289 = vmatpush1.bf16.msra.mxu1 %v6425_v52  ;;  %v6505_v51 = vld [vmem:[%s8930_s1 + $0x664] ss:$16 sps:$4 sm:$0xff]   ;;  %v6503_v52 = vld [vmem:[%s8930_s1 + $0x660] ss:$16 sps:$4 sm:$0xff]  }
  0xa0   : > { %2156 = vmatprep.subr.bf16.mxu0 %v6430_v54  ;;  %2290 = vmatprep.subr.bf16.mxu1 %v6433_v55  ;;  %v6506_v54 = vld [vmem:[%s8930_s1 + $0x668] ss:$16 sps:$4 sm:$0xff]   ;;  %v6511_v55 = vld [vmem:[%s8930_s1 + $0x684] ss:$16 sps:$4 sm:$0xff]  }
  0xa1   : > { %2174 = vmatprep.mubr.bf16.mxu0 %v7188_v47  ;;  %2308 = vmatprep.mubr.bf16.mxu1 %v7188_v47  ;;  %v6445_v47 = vld [vmem:[%s8930_s1 + $0x52c] ss:$16 sps:$4 sm:$0xff]  }
  0xa3   : > { %2157 = vmatpush1.bf16.msra.mxu0 %v6428_v56  ;;  %2291 = vmatpush1.bf16.msra.mxu1 %v6431_v57  ;;  %v6514_v56 = vld [vmem:[%s8930_s1 + $0x68c] ss:$16 sps:$4 sm:$0xff]   ;;  %v6512_v57 = vld [vmem:[%s8930_s1 + $0x688] ss:$16 sps:$4 sm:$0xff]  }
  0xa4   : > { %2158 = vmatprep.subr.bf16.mxu0 %v6436_v58  ;;  %2292 = vmatprep.subr.bf16.mxu1 %v6439_v59  ;;  %v6517_v58 = vld [vmem:[%s8930_s1 + $0x6a4] ss:$16 sps:$4 sm:$0xff]   ;;  %v6515_v59 = vld [vmem:[%s8930_s1 + $0x6a0] ss:$16 sps:$4 sm:$0xff]  }
  0xa7   : > { %2159 = vmatpush1.bf16.msra.mxu0 %v6434_v60  ;;  %2293 = vmatpush1.bf16.msra.mxu1 %v6437_v61  ;;  %v6518_v60 = vld [vmem:[%s8930_s1 + $0x6a8] ss:$16 sps:$4 sm:$0xff]   ;;  %v6523_v61 = vld [vmem:[%s8930_s1 + $0x6c4] ss:$16 sps:$4 sm:$0xff]  }
  0xa8   : > { %2160 = vmatprep.subr.bf16.mxu0 %v6442_v62  ;;  %2294 = vmatprep.subr.bf16.mxu1 %v6445_v47  ;;  %v6526_v62 = vld [vmem:[%s8930_s1 + $0x6cc] ss:$16 sps:$4 sm:$0xff]   ;;  %v6524_v47 = vld [vmem:[%s8930_s1 + $0x6c8] ss:$16 sps:$4 sm:$0xff]  }
  0xab   : > { %2161 = vmatpush1.bf16.msra.mxu0 %v6440_v63  ;;  %2295 = vmatpush1.bf16.msra.mxu1 %v6443_v0  ;;  %v6529_v63 = vld [vmem:[%s8930_s1 + $0x6e4] ss:$16 sps:$4 sm:$0xff]   ;;  %v6527_v0 = vld [vmem:[%s8930_s1 + $0x6e0] ss:$16 sps:$4 sm:$0xff]  }
  0xac   : > { %2162 = vmatprep.subr.bf16.mxu0 %v6448_v1  ;;  %2296 = vmatprep.subr.bf16.mxu1 %v6451_v2  ;;  %v6530_v1 = vld [vmem:[%s8930_s1 + $0x6e8] ss:$16 sps:$4 sm:$0xff]   ;;  %v6535_v2 = vld [vmem:[%s8930_s1 + $0x704] ss:$16 sps:$4 sm:$0xff]  }
  0xaf   : > { %2163 = vmatpush1.bf16.msra.mxu0 %v6446_v3  ;;  %2297 = vmatpush1.bf16.msra.mxu1 %v6449_v4  ;;  %v6538_v3 = vld [vmem:[%s8930_s1 + $0x70c] ss:$16 sps:$4 sm:$0xff]   ;;  %v6536_v4 = vld [vmem:[%s8930_s1 + $0x708] ss:$16 sps:$4 sm:$0xff]  }
  0xb0   : > { %2164 = vmatprep.subr.bf16.mxu0 %v6454_v6  ;;  %2298 = vmatprep.subr.bf16.mxu1 %v6457_v7  ;;  %v6541_v6 = vld [vmem:[%s8930_s1 + $0x724] ss:$16 sps:$4 sm:$0xff]   ;;  %v6539_v7 = vld [vmem:[%s8930_s1 + $0x720] ss:$16 sps:$4 sm:$0xff]  }
  0xb3   : > { %2165 = vmatpush1.bf16.msra.mxu0 %v6452_v8  ;;  %2299 = vmatpush1.bf16.msra.mxu1 %v6455_v9  ;;  %v6542_v8 = vld [vmem:[%s8930_s1 + $0x728] ss:$16 sps:$4 sm:$0xff]   ;;  %v6547_v9 = vld [vmem:[%s8930_s1 + $0x744] ss:$16 sps:$4 sm:$0xff]  }
  0xb4   : > { %2166 = vmatprep.subr.bf16.mxu0 %v6460_v10  ;;  %2300 = vmatprep.subr.bf16.mxu1 %v6463_v11  ;;  %v6550_v10 = vld [vmem:[%s8930_s1 + $0x74c] ss:$16 sps:$4 sm:$0xff]   ;;  %v6545_v11 = vld [vmem:[%s8930_s1 + $0x740] ss:$16 sps:$4 sm:$0xff]  }
  0xb7   : > { %2167 = vmatpush1.bf16.msra.mxu0 %v6458_v12  ;;  %2301 = vmatpush1.bf16.msra.mxu1 %v6461_v16  ;;  %v6548_v12 = vld [vmem:[%s8930_s1 + $0x748] ss:$16 sps:$4 sm:$0xff]   ;;  %v6553_v16 = vld [vmem:[%s8930_s1 + $0x764] ss:$16 sps:$4 sm:$0xff]  }
  0xb8   : > { %2168 = vmatprep.subr.bf16.mxu0 %v6466_v17  ;;  %2302 = vmatprep.subr.bf16.mxu1 %v6469_v18  ;;  %v6556_v17 = vld [vmem:[%s8930_s1 + $0x76c] ss:$16 sps:$4 sm:$0xff]   ;;  %v6551_v18 = vld [vmem:[%s8930_s1 + $0x760] ss:$16 sps:$4 sm:$0xff]  }
  0xbb   : > { %2169 = vmatpush1.bf16.msra.mxu0 %v6464_v19  ;;  %2303 = vmatpush1.bf16.msra.mxu1 %v6467_v21  ;;  %v6554_v19 = vld [vmem:[%s8930_s1 + $0x768] ss:$16 sps:$4 sm:$0xff]   ;;  %v6559_v21 = vld [vmem:[%s8930_s1 + $0x784] ss:$16 sps:$4 sm:$0xff]  }
  0xbc   : > { %2170 = vmatprep.subr.bf16.mxu0 %v6475_v22  ;;  %2304 = vmatprep.subr.bf16.mxu1 %v6478_v24  ;;  %v6562_v22 = vld [vmem:[%s8930_s1 + $0x78c] ss:$16 sps:$4 sm:$0xff]   ;;  %v6557_v24 = vld [vmem:[%s8930_s1 + $0x780] ss:$16 sps:$4 sm:$0xff]  }
  0xbf   : > { %2171 = vmatpush1.bf16.msra.mxu0 %v6473_v26  ;;  %2305 = vmatpush1.bf16.msra.mxu1 %v6476_v28  ;;  %v6560_v26 = vld [vmem:[%s8930_s1 + $0x788] ss:$16 sps:$4 sm:$0xff]   ;;  %v6565_v28 = vld [vmem:[%s8930_s1 + $0x7a4] ss:$16 sps:$4 sm:$0xff]  }
  0xc0   : > { %2172 = vmatprep.subr.bf16.mxu0 %v6481_v29  ;;  %2306 = vmatprep.subr.bf16.mxu1 %v6484_v30  ;;  %v6568_v29 = vld [vmem:[%s8930_s1 + $0x7ac] ss:$16 sps:$4 sm:$0xff]   ;;  %v6563_v30 = vld [vmem:[%s8930_s1 + $0x7a0] ss:$16 sps:$4 sm:$0xff]  }
  0xc3   : > { %2173 = vmatpush1.bf16.msra.mxu0 %v6479_v32  ;;  %2307 = vmatpush1.bf16.msra.mxu1 %v6482_v34  ;;  %v6566_v32 = vld [vmem:[%s8930_s1 + $0x7a8] ss:$16 sps:$4 sm:$0xff]   ;;  %v6571_v34 = vld [vmem:[%s8930_s1 + $0x7c4] ss:$16 sps:$4 sm:$0xff]  }
  0xc4   : > { %2209 = vmatprep.subr.bf16.mxu0 %v6487_v36  ;;  %2343 = vmatprep.subr.bf16.mxu1 %v6490_v37  ;;  %v6574_v36 = vld [vmem:[%s8930_s1 + $0x7cc] ss:$16 sps:$4 sm:$0xff]   ;;  %v6569_v37 = vld [vmem:[%s8930_s1 + $0x7c0] ss:$16 sps:$4 sm:$0xff]  }
  0xc6   : > { %2175 = vmatmul.mubr.bf16.vlgmr.msra.gmra.mrb[24].mxu0 %v7256_v5  ;;  %2309 = vmatmul.mubr.bf16.vlgmr.msra.gmra.mrb[20].mxu1 %v7256_v5  ;;  %v6502_v5 = vld [vmem:[%s8930_s1 + $0x64c] ss:$16 sps:$4 sm:$0xff]  }
  0xc7   : > { %2210 = vmatpush1.bf16.msra.mxu0 %v6485_v38  ;;  %2344 = vmatpush1.bf16.msra.mxu1 %v6488_v41  ;;  %v6572_v38 = vld [vmem:[%s8930_s1 + $0x7c8] ss:$16 sps:$4 sm:$0xff]   ;;  %v6577_v41 = vld [vmem:[%s8930_s1 + $0x7e4] ss:$16 sps:$4 sm:$0xff]  }
  0xc8   : > { %2211 = vmatprep.subr.bf16.mxu0 %v6493_v42  ;;  %2345 = vmatprep.subr.bf16.mxu1 %v6496_v43  ;;  %v6580_v42 = vld [vmem:[%s8930_s1 + $0x7ec] ss:$16 sps:$4 sm:$0xff]   ;;  %v6575_v43 = vld [vmem:[%s8930_s1 + $0x7e0] ss:$16 sps:$4 sm:$0xff]  }
  0xc9   : > { %2182 = vmatprep.mubr.bf16.mxu0 %v7285_v14  ;;  %2316 = vmatprep.mubr.bf16.mxu1 %v7285_v14  ;;  %v6508_v14 = vld [vmem:[%s8930_s1 + $0x66c] ss:$16 sps:$4 sm:$0xff]  }
  0xcb   : > { %2212 = vmatpush1.bf16.msra.mxu0 %v6491_v44  ;;  %2346 = vmatpush1.bf16.msra.mxu1 %v6494_v46  ;;  %v6578_v44 = vld [vmem:[%s8930_s1 + $0x7e8] ss:$16 sps:$4 sm:$0xff]   ;;  %v6583_v46 = vld [vmem:[%s8930_s1 + $0x804] ss:$16 sps:$4 sm:$0xff]  }
  0xcc   : > { %2213 = vmatprep.subr.bf16.mxu0 %v6499_v48  ;;  %2347 = vmatprep.subr.bf16.mxu1 %v6502_v5  ;;  %v6586_v48 = vld [vmem:[%s8930_s1 + $0x80c] ss:$16 sps:$4 sm:$0xff]   ;;  %v6581_v5 = vld [vmem:[%s8930_s1 + $0x800] ss:$16 sps:$4 sm:$0xff]  }
  0xce   : > { %2183 = vmatmul.mubr.bf16.gmra.mrb[28].mxu0 %v7288_v15  ;;  %2317 = vmatmul.mubr.bf16.gmra.mrb[24].mxu1 %v7288_v15  ;;  %v6509_v15 = vld [vmem:[%s8930_s1 + $0x680] ss:$16 sps:$4 sm:$0xff]  }
  0xcf   : > { %2214 = vmatpush1.bf16.msra.mxu0 %v6497_v49  ;;  %2348 = vmatpush1.bf16.msra.mxu1 %v6500_v50  ;;  %v6584_v49 = vld [vmem:[%s8930_s1 + $0x808] ss:$16 sps:$4 sm:$0xff]   ;;  %v6589_v50 = vld [vmem:[%s8930_s1 + $0x824] ss:$16 sps:$4 sm:$0xff]  }
  0xd0   : > { %2215 = vmatprep.subr.bf16.mxu0 %v6505_v51  ;;  %2349 = vmatprep.subr.bf16.mxu1 %v6508_v14  ;;  %v6592_v51 = vld [vmem:[%s8930_s1 + $0x82c] ss:$16 sps:$4 sm:$0xff]   ;;  %v6587_v14 = vld [vmem:[%s8930_s1 + $0x820] ss:$16 sps:$4 sm:$0xff]  }
  0xd1   : > { %2192 = vmatprep.mubr.bf16.mxu0 %v7316_v23  ;;  %2326 = vmatprep.mubr.bf16.mxu1 %v7316_v23  ;;  %v6520_v23 = vld [vmem:[%s8930_s1 + $0x6ac] ss:$16 sps:$4 sm:$0xff]  }
  0xd3   : > { %2216 = vmatpush1.bf16.msra.mxu0 %v6503_v52  ;;  %2350 = vmatpush1.bf16.msra.mxu1 %v6506_v54  ;;  %v6590_v52 = vld [vmem:[%s8930_s1 + $0x828] ss:$16 sps:$4 sm:$0xff]   ;;  %v6595_v54 = vld [vmem:[%s8930_s1 + $0x844] ss:$16 sps:$4 sm:$0xff]  }
  0xd4   : > { %2217 = vmatprep.subr.bf16.mxu0 %v6511_v55  ;;  %2351 = vmatprep.subr.bf16.mxu1 %v6514_v56  ;;  %v6593_v55 = vld [vmem:[%s8930_s1 + $0x840] ss:$16 sps:$4 sm:$0xff]   ;;  %v6596_v56 = vld [vmem:[%s8930_s1 + $0x848] ss:$16 sps:$4 sm:$0xff]  }
  0xd6   : > { %2193 = vmatmul.mubr.bf16.gmra.mrb[32].mxu0 %v7322_v25  ;;  %2327 = vmatmul.mubr.bf16.gmra.mrb[28].mxu1 %v7322_v25  ;;  %v6521_v25 = vld [vmem:[%s8930_s1 + $0x6c0] ss:$16 sps:$4 sm:$0xff]  }
  0xd7   : > { %2218 = vmatpush1.bf16.msra.mxu0 %v6509_v15  ;;  %2352 = vmatpush1.bf16.msra.mxu1 %v6512_v57  ;;  %v6601_v15 = vld [vmem:[%s8930_s1 + $0x864] ss:$16 sps:$4 sm:$0xff]   ;;  %v6599_v57 = vld [vmem:[%s8930_s1 + $0x860] ss:$16 sps:$4 sm:$0xff]  }
  0xd8   : > { %2219 = vmatprep.subr.bf16.mxu0 %v6517_v58  ;;  %2353 = vmatprep.subr.bf16.mxu1 %v6520_v23  ;;  %v6602_v58 = vld [vmem:[%s8930_s1 + $0x868] ss:$16 sps:$4 sm:$0xff]   ;;  %v6607_v23 = vld [vmem:[%s8930_s1 + $0x884] ss:$16 sps:$4 sm:$0xff]  }
  0xd9   : > { %2202 = vmatprep.mubr.bf16.mxu0 %v7344_v31  ;;  %2336 = vmatprep.mubr.bf16.mxu1 %v7344_v31  ;;  %v6532_v31 = vld [vmem:[%s8930_s1 + $0x6ec] ss:$16 sps:$4 sm:$0xff]  }
  0xdb   : > { %2220 = vmatpush1.bf16.msra.mxu0 %v6515_v59  ;;  %2354 = vmatpush1.bf16.msra.mxu1 %v6518_v60  ;;  %v6605_v59 = vld [vmem:[%s8930_s1 + $0x880] ss:$16 sps:$4 sm:$0xff]   ;;  %v6608_v60 = vld [vmem:[%s8930_s1 + $0x888] ss:$16 sps:$4 sm:$0xff]  }
  0xdc   : > { %2221 = vmatprep.subr.bf16.mxu0 %v6523_v61  ;;  %2355 = vmatprep.subr.bf16.mxu1 %v6526_v62  ;;  %v6613_v61 = vld [vmem:[%s8930_s1 + $0x8a4] ss:$16 sps:$4 sm:$0xff]   ;;  %v6611_v62 = vld [vmem:[%s8930_s1 + $0x8a0] ss:$16 sps:$4 sm:$0xff]  }
  0xde   : > { %2203 = vmatmul.mubr.bf16.gmra.mrb[36].mxu0 %v7358_v35  ;;  %2337 = vmatmul.mubr.bf16.gmra.mrb[32].mxu1 %v7358_v35  ;;  %v6533_v35 = vld [vmem:[%s8930_s1 + $0x700] ss:$16 sps:$4 sm:$0xff]  }
  0xdf   : > { %2222 = vmatpush1.bf16.msra.mxu0 %v6521_v25  ;;  %2356 = vmatpush1.bf16.msra.mxu1 %v6524_v47  ;;  %v6614_v25 = vld [vmem:[%s8930_s1 + $0x8a8] ss:$16 sps:$4 sm:$0xff]   ;;  %v6619_v47 = vld [vmem:[%s8930_s1 + $0x8c4] ss:$16 sps:$4 sm:$0xff]  }
  0xe0   : > { %2223 = vmatprep.subr.bf16.mxu0 %v6529_v63  ;;  %2357 = vmatprep.subr.bf16.mxu1 %v6532_v31  ;;  %v6617_v63 = vld [vmem:[%s8930_s1 + $0x8c0] ss:$16 sps:$4 sm:$0xff]   ;;  %v6620_v31 = vld [vmem:[%s8930_s1 + $0x8c8] ss:$16 sps:$4 sm:$0xff]  }
  0xe1   : > { %2241 = vmatprep.mubr.bf16.mxu0 %v7375_v40  ;;  %2375 = vmatprep.mubr.bf16.mxu1 %v7375_v40  ;;  %v6544_v40 = vld [vmem:[%s8930_s1 + $0x72c] ss:$16 sps:$4 sm:$0xff]  }
  0xe3   : > { %2224 = vmatpush1.bf16.msra.mxu0 %v6527_v0  ;;  %2358 = vmatpush1.bf16.msra.mxu1 %v6530_v1  ;;  %v6625_v0 = vld [vmem:[%s8930_s1 + $0x8e4] ss:$16 sps:$4 sm:$0xff]   ;;  %v6623_v1 = vld [vmem:[%s8930_s1 + $0x8e0] ss:$16 sps:$4 sm:$0xff]  }
  0xe4   : > { %2225 = vmatprep.subr.bf16.mxu0 %v6535_v2  ;;  %2359 = vmatprep.subr.bf16.mxu1 %v6538_v3  ;;  %v6626_v2 = vld [vmem:[%s8930_s1 + $0x8e8] ss:$16 sps:$4 sm:$0xff]   ;;  %v6631_v3 = vld [vmem:[%s8930_s1 + $0x904] ss:$16 sps:$4 sm:$0xff]  }
  0xe7   : > { %2226 = vmatpush1.bf16.msra.mxu0 %v6533_v35  ;;  %2360 = vmatpush1.bf16.msra.mxu1 %v6536_v4  ;;  %v6634_v35 = vld [vmem:[%s8930_s1 + $0x90c] ss:$16 sps:$4 sm:$0xff]   ;;  %v8029_v4 = vld [vmem:[%s7179_s7 + $0x4] ss:$16 sps:$4 sm:$0xff]  }
  0xe8   : > { %2227 = vmatprep.subr.bf16.mxu0 %v6541_v6  ;;  %2361 = vmatprep.subr.bf16.mxu1 %v6544_v40  ;;  %v6632_v6 = vld [vmem:[%s8930_s1 + $0x908] ss:$16 sps:$4 sm:$0xff]   ;;  %v6637_v40 = vld [vmem:[%s8930_s1 + $0x924] ss:$16 sps:$4 sm:$0xff]  }
  0xeb   : > { %2228 = vmatpush1.bf16.msra.mxu0 %v6539_v7  ;;  %2362 = vmatpush1.bf16.msra.mxu1 %v6542_v8  ;;  %v6640_v7 = vld [vmem:[%s8930_s1 + $0x92c] ss:$16 sps:$4 sm:$0xff]   ;;  %v6635_v8 = vld [vmem:[%s8930_s1 + $0x920] ss:$16 sps:$4 sm:$0xff]  }
  0xec   : > { %2229 = vmatprep.subr.bf16.mxu0 %v6547_v9  ;;  %2363 = vmatprep.subr.bf16.mxu1 %v6550_v10  ;;  %v6638_v9 = vld [vmem:[%s8930_s1 + $0x928] ss:$16 sps:$4 sm:$0xff]   ;;  %v6643_v10 = vld [vmem:[%s8930_s1 + $0x944] ss:$16 sps:$4 sm:$0xff]  }
  0xef   : > { %2230 = vmatpush1.bf16.msra.mxu0 %v6545_v11  ;;  %2364 = vmatpush1.bf16.msra.mxu1 %v6548_v12  ;;  %v6646_v11 = vld [vmem:[%s8930_s1 + $0x94c] ss:$16 sps:$4 sm:$0xff]  }
  0xf0   : > { %2231 = vmatprep.subr.bf16.mxu0 %v6553_v16  ;;  %2365 = vmatprep.subr.bf16.mxu1 %v6556_v17  ;;  %v6641_v17 = vld [vmem:[%s8930_s1 + $0x940] ss:$16 sps:$4 sm:$0xff]  }
  0xf3   : > { %2232 = vmatpush1.bf16.msra.mxu0 %v6551_v18  ;;  %2366 = vmatpush1.bf16.msra.mxu1 %v6554_v19  ;;  %v6644_v18 = vld [vmem:[%s8930_s1 + $0x948] ss:$16 sps:$4 sm:$0xff]  }
  0xf4   : > { %2233 = vmatprep.subr.bf16.mxu0 %v6559_v21  ;;  %2367 = vmatprep.subr.bf16.mxu1 %v6562_v22  ;;  %v6649_v21 = vld [vmem:[%s8930_s1 + $0x964] ss:$16 sps:$4 sm:$0xff]   ;;  %v6652_v22 = vld [vmem:[%s8930_s1 + $0x96c] ss:$16 sps:$4 sm:$0xff]  }
  0xf7   : > { %2234 = vmatpush1.bf16.msra.mxu0 %v6557_v24  ;;  %2368 = vmatpush1.bf16.msra.mxu1 %v6560_v26  ;;  %v6647_v26 = vld [vmem:[%s8930_s1 + $0x960] ss:$16 sps:$4 sm:$0xff]  }
  0xf8   : > { %2235 = vmatprep.subr.bf16.mxu0 %v6565_v28  ;;  %2369 = vmatprep.subr.bf16.mxu1 %v6568_v29  ;;  %v6650_v28 = vld [vmem:[%s8930_s1 + $0x968] ss:$16 sps:$4 sm:$0xff]   ;;  %v6655_v29 = vld [vmem:[%s8930_s1 + $0x984] ss:$16 sps:$4 sm:$0xff]  }
  0xfb   : > { %2236 = vmatpush1.bf16.msra.mxu0 %v6563_v30  ;;  %2370 = vmatpush1.bf16.msra.mxu1 %v6566_v32  ;;  %v6658_v30 = vld [vmem:[%s8930_s1 + $0x98c] ss:$16 sps:$4 sm:$0xff]  }
  0xfc   : > { %2237 = vmatprep.subr.bf16.mxu0 %v6571_v34  ;;  %2371 = vmatprep.subr.bf16.mxu1 %v6574_v36 }
  0xff   : > { %2238 = vmatpush1.bf16.msra.mxu0 %v6569_v37  ;;  %2372 = vmatpush1.bf16.msra.mxu1 %v6572_v38  ;;  %v6653_v38 = vld [vmem:[%s8930_s1 + $0x980] ss:$16 sps:$4 sm:$0xff]  }
 0x100   : > { %2239 = vmatprep.subr.bf16.mxu0 %v6577_v41  ;;  %2373 = vmatprep.subr.bf16.mxu1 %v6580_v42  ;;  %v6656_v41 = vld [vmem:[%s8930_s1 + $0x988] ss:$16 sps:$4 sm:$0xff]  }
 0x103   : > { %2240 = vmatpush1.bf16.msra.mxu0 %v6575_v43  ;;  %2374 = vmatpush1.bf16.msra.mxu1 %v6578_v44  ;;  %v6661_v44 = vld [vmem:[%s8930_s1 + $0x9a4] ss:$16 sps:$4 sm:$0xff]  }
 0x104   : > { %3244 = vmatprep.subr.bf16.mxu0 %v6583_v46  ;;  %3378 = vmatprep.subr.bf16.mxu1 %v6586_v48  ;;  %v6664_v46 = vld [vmem:[%s8930_s1 + $0x9ac] ss:$16 sps:$4 sm:$0xff]  }
 0x106   : > { %2242 = vmatmul.mubr.bf16.vlgmr.msra.gmra.mrb[24].mxu0 %v7482_v13  ;;  %2376 = vmatmul.mubr.bf16.vlgmr.msra.gmra.mrb[20].mxu1 %v7482_v13  ;;  %v6598_v13 = vld [vmem:[%s8930_s1 + $0x84c] ss:$16 sps:$4 sm:$0xff]  }
 0x107   : > { %3245 = vmatpush1.bf16.msra.mxu0 %v6581_v5  ;;  %3379 = vmatpush1.bf16.msra.mxu1 %v6584_v49  ;;  %v6659_v49 = vld [vmem:[%s8930_s1 + $0x9a0] ss:$16 sps:$4 sm:$0xff]  }
 0x108   : > { %3246 = vmatprep.subr.bf16.mxu0 %v6589_v50  ;;  %3380 = vmatprep.subr.bf16.mxu1 %v6592_v51  ;;  %v6662_v50 = vld [vmem:[%s8930_s1 + $0x9a8] ss:$16 sps:$4 sm:$0xff]   ;;  %v6667_v51 = vld [vmem:[%s8930_s1 + $0x9c4] ss:$16 sps:$4 sm:$0xff]  }
 0x109   : > { %2249 = vmatprep.mubr.bf16.mxu0 %v7497_v20  ;;  %2383 = vmatprep.mubr.bf16.mxu1 %v7497_v20  ;;  %v6604_v20 = vld [vmem:[%s8930_s1 + $0x86c] ss:$16 sps:$4 sm:$0xff]  }
 0x10b   : > { %3247 = vmatpush1.bf16.msra.mxu0 %v6587_v14  ;;  %3381 = vmatpush1.bf16.msra.mxu1 %v6590_v52  ;;  %v6670_v14 = vld [vmem:[%s8930_s1 + $0x9cc] ss:$16 sps:$4 sm:$0xff]   ;;  %v6665_v52 = vld [vmem:[%s8930_s1 + $0x9c0] ss:$16 sps:$4 sm:$0xff]  }
 0x10c   : > { %3248 = vmatprep.subr.bf16.mxu0 %v6595_v54  ;;  %3382 = vmatprep.subr.bf16.mxu1 %v6598_v13  ;;  %v6668_v54 = vld [vmem:[%s8930_s1 + $0x9c8] ss:$16 sps:$4 sm:$0xff]   ;;  %v6673_v13 = vld [vmem:[%s8930_s1 + $0x9e4] ss:$16 sps:$4 sm:$0xff]  }
 0x10e   : > { %2250 = vmatmul.mubr.bf16.gmra.mrb[28].mxu0 %v7516_v27  ;;  %2384 = vmatmul.mubr.bf16.gmra.mrb[24].mxu1 %v7516_v27  ;;  %v6610_v27 = vld [vmem:[%s8930_s1 + $0x88c] ss:$16 sps:$4 sm:$0xff]  }
 0x10f   : > { %3249 = vmatpush1.bf16.msra.mxu0 %v6593_v55  ;;  %3383 = vmatpush1.bf16.msra.mxu1 %v6596_v56  ;;  %v6676_v55 = vld [vmem:[%s8930_s1 + $0x9ec] ss:$16 sps:$4 sm:$0xff]   ;;  %v6671_v56 = vld [vmem:[%s8930_s1 + $0x9e0] ss:$16 sps:$4 sm:$0xff]  }
 0x110   : > { %3250 = vmatprep.subr.bf16.mxu0 %v6601_v15  ;;  %3384 = vmatprep.subr.bf16.mxu1 %v6604_v20  ;;  %v6674_v15 = vld [vmem:[%s8930_s1 + $0x9e8] ss:$16 sps:$4 sm:$0xff]   ;;  %v6679_v20 = vld [vmem:[%s8930_s1 + $0xa04] ss:$16 sps:$4 sm:$0xff]  }
 0x111   : > { %2259 = vmatprep.mubr.bf16.mxu0 %v7531_v33  ;;  %2393 = vmatprep.mubr.bf16.mxu1 %v7531_v33  ;;  %v6616_v33 = vld [vmem:[%s8930_s1 + $0x8ac] ss:$16 sps:$4 sm:$0xff]  }
 0x113   : > { %3251 = vmatpush1.bf16.msra.mxu0 %v6599_v57  ;;  %3385 = vmatpush1.bf16.msra.mxu1 %v6602_v58  ;;  %v6682_v57 = vld [vmem:[%s8930_s1 + $0xa0c] ss:$16 sps:$4 sm:$0xff]   ;;  %v6677_v58 = vld [vmem:[%s8930_s1 + $0xa00] ss:$16 sps:$4 sm:$0xff]  }
 0x114   : > { %3252 = vmatprep.subr.bf16.mxu0 %v6607_v23  ;;  %3386 = vmatprep.subr.bf16.mxu1 %v6610_v27  ;;  %v6680_v23 = vld [vmem:[%s8930_s1 + $0xa08] ss:$16 sps:$4 sm:$0xff]   ;;  %v6685_v27 = vld [vmem:[%s8930_s1 + $0xa24] ss:$16 sps:$4 sm:$0xff]  }
 0x116   : > { %2260 = vmatmul.mubr.bf16.gmra.mrb[32].mxu0 %v7550_v39  ;;  %2394 = vmatmul.mubr.bf16.gmra.mrb[28].mxu1 %v7550_v39  ;;  %v6622_v39 = vld [vmem:[%s8930_s1 + $0x8cc] ss:$16 sps:$4 sm:$0xff]  }
 0x117   : > { %3253 = vmatpush1.bf16.msra.mxu0 %v6605_v59  ;;  %3387 = vmatpush1.bf16.msra.mxu1 %v6608_v60  ;;  %v6688_v59 = vld [vmem:[%s8930_s1 + $0xa2c] ss:$16 sps:$4 sm:$0xff]   ;;  %v8146_v60 = vld [vmem:[%s7179_s7] ss:$16 sps:$4 sm:$0xff]  }
 0x118   : > { %3254 = vmatprep.subr.bf16.mxu0 %v6613_v61  ;;  %3388 = vmatprep.subr.bf16.mxu1 %v6616_v33  ;;  %v6683_v61 = vld [vmem:[%s8930_s1 + $0xa20] ss:$16 sps:$4 sm:$0xff]   ;;  %v6686_v33 = vld [vmem:[%s8930_s1 + $0xa28] ss:$16 sps:$4 sm:$0xff]  }
 0x119   : > { %2269 = vmatprep.mubr.bf16.mxu0 %v7565_v45  ;;  %2403 = vmatprep.mubr.bf16.mxu1 %v7565_v45  ;;  %v6628_v45 = vld [vmem:[%s8930_s1 + $0x8ec] ss:$16 sps:$4 sm:$0xff]  }
 0x11b   : > { %3255 = vmatpush1.bf16.msra.mxu0 %v6611_v62  ;;  %3389 = vmatpush1.bf16.msra.mxu1 %v6614_v25  ;;  %v6691_v62 = vld [vmem:[%s8930_s1 + $0xa44] ss:$16 sps:$4 sm:$0xff]   ;;  %v6694_v25 = vld [vmem:[%s8930_s1 + $0xa4c] ss:$16 sps:$4 sm:$0xff]  }
 0x11c   : > { %3256 = vmatprep.subr.bf16.mxu0 %v6619_v47  ;;  %3390 = vmatprep.subr.bf16.mxu1 %v6622_v39  ;;  %v8163_v47 = vld [vmem:[%s7179_s7 + $0x24] ss:$16 sps:$4 sm:$0xff]   ;;  %v6689_v39 = vld [vmem:[%s8930_s1 + $0xa40] ss:$16 sps:$4 sm:$0xff]  }
 0x11e   : > { %2270 = vmatmul.mubr.bf16.gmra.mrb[40].mxu0 %v7590_v53  ;;  %2404 = vmatmul.mubr.bf16.gmra.mrb[36].mxu1 %v7590_v53  ;;  %v6629_v53 = vld [vmem:[%s8930_s1 + $0x900] ss:$16 sps:$4 sm:$0xff]  }
 0x11f   : > { %3257 = vmatpush1.bf16.msra.mxu0 %v6617_v63  ;;  %3391 = vmatpush1.bf16.msra.mxu1 %v6620_v31  ;;  %v6692_v63 = vld [vmem:[%s8930_s1 + $0xa48] ss:$16 sps:$4 sm:$0xff]   ;;  %v6697_v31 = vld [vmem:[%s8930_s1 + $0xa64] ss:$16 sps:$4 sm:$0xff]  }
 0x120   : > { %3258 = vmatprep.subr.bf16.mxu0 %v6625_v0  ;;  %3392 = vmatprep.subr.bf16.mxu1 %v6628_v45  ;;  %v6700_v0 = vld [vmem:[%s8930_s1 + $0xa6c] ss:$16 sps:$4 sm:$0xff]   ;;  %v8180_v45 = vld [vmem:[%s7179_s7 + $0x20] ss:$16 sps:$4 sm:$0xff]  }
 0x121   : > { %3276 = vmatprep.mubr.bf16.mxu0 %v8029_v4  ;;  %3410 = vmatprep.mubr.bf16.mxu1 %v8029_v4 }
 0x123   : > { %3259 = vmatpush1.bf16.msra.mxu0 %v6623_v1  ;;  %3393 = vmatpush1.bf16.msra.mxu1 %v6626_v2  ;;  %v6695_v1 = vld [vmem:[%s8930_s1 + $0xa60] ss:$16 sps:$4 sm:$0xff]   ;;  %v6698_v2 = vld [vmem:[%s8930_s1 + $0xa68] ss:$16 sps:$4 sm:$0xff]  }
 0x124   : > { %3260 = vmatprep.subr.bf16.mxu0 %v6631_v3  ;;  %3394 = vmatprep.subr.bf16.mxu1 %v6634_v35  ;;  %v6703_v3 = vld [vmem:[%s8930_s1 + $0xa84] ss:$16 sps:$4 sm:$0xff]   ;;  %v6706_v35 = vld [vmem:[%s8930_s1 + $0xa8c] ss:$16 sps:$4 sm:$0xff]  }
 0x127   : > { %3261 = vmatpush1.bf16.msra.mxu0 %v6629_v53  ;;  %3395 = vmatpush1.bf16.msra.mxu1 %v6632_v6  ;;  %v8197_v53 = vld [vmem:[%s7179_s7 + $0x44] ss:$16 sps:$4 sm:$0xff]   ;;  %v6701_v6 = vld [vmem:[%s8930_s1 + $0xa80] ss:$16 sps:$4 sm:$0xff]  }
 0x128   : > { %3262 = vmatprep.subr.bf16.mxu0 %v6637_v40  ;;  %3396 = vmatprep.subr.bf16.mxu1 %v6640_v7  ;;  %v6704_v40 = vld [vmem:[%s8930_s1 + $0xa88] ss:$16 sps:$4 sm:$0xff]   ;;  %v6709_v7 = vld [vmem:[%s8930_s1 + $0xaa4] ss:$16 sps:$4 sm:$0xff]  }
 0x129   : > { %v8057_v12 = vpop.f32.mrb[8].mxu0 }
 0x12a   : > { %v8059_v16 = vpop.f32.mrb[9].mxu0 }
 0x12b   : > { %3263 = vmatpush1.bf16.msra.mxu0 %v6635_v8  ;;  %3397 = vmatpush1.bf16.msra.mxu1 %v6638_v9  ;;  %v1098_v19 = vpop.f32.mrb[10].mxu0  ;;  %v6712_v8 = vld [vmem:[%s8930_s1 + $0xaac] ss:$16 sps:$4 sm:$0xff]   ;;  %v8214_v9 = vld [vmem:[%s7179_s7 + $0x40] ss:$16 sps:$4 sm:$0xff]  }
 0x12c   : > { %3264 = vmatprep.subr.bf16.mxu0 %v6643_v10  ;;  %3398 = vmatprep.subr.bf16.mxu1 %v6646_v11  ;;  %v1099_v24 = vpop.f32.mrb[11].mxu0  ;;  %v6707_v10 = vld [vmem:[%s8930_s1 + $0xaa0] ss:$16 sps:$4 sm:$0xff]   ;;  %v6710_v11 = vld [vmem:[%s8930_s1 + $0xaa8] ss:$16 sps:$4 sm:$0xff]  }
 0x12f   : > { %3265 = vmatpush1.bf16.msra.mxu0 %v6641_v17  ;;  %3399 = vmatpush1.bf16.msra.mxu1 %v6644_v18  ;;  %v6715_v17 = vld [vmem:[%s8930_s1 + $0xac4] ss:$16 sps:$4 sm:$0xff]   ;;  %v6718_v18 = vld [vmem:[%s8930_s1 + $0xacc] ss:$16 sps:$4 sm:$0xff]  }
 0x130   : > { %3266 = vmatprep.subr.bf16.mxu0 %v6649_v21  ;;  %3400 = vmatprep.subr.bf16.mxu1 %v6652_v22  ;;  %v8231_v22 = vld [vmem:[%s7179_s7 + $0x64] ss:$16 sps:$4 sm:$0xff]  }
 0x131   : > { %v1102_v32 = vpop.f32.mrb[12].mxu0  ;;  %v1236_v34 = vpop.f32.mrb[12].mxu1 }
 0x132   : > { %v1103_v36 = vpop.f32.mrb[13].mxu0  ;;  %v1237_v37 = vpop.f32.mrb[13].mxu1  ;;  %v6716_v34 = vld [vmem:[%s8930_s1 + $0xac8] ss:$16 sps:$4 sm:$0xff]  }
 0x133   : > { %3267 = vmatpush1.bf16.msra.mxu0 %v6647_v26  ;;  %3401 = vmatpush1.bf16.msra.mxu1 %v6650_v28  ;;  %v1104_v42 = vpop.f32.mrb[14].mxu0  ;;  %v1238_v43 = vpop.f32.mrb[14].mxu1  ;;  %v6713_v28 = vld [vmem:[%s8930_s1 + $0xac0] ss:$16 sps:$4 sm:$0xff]  }
 0x134   : > { %3268 = vmatprep.subr.bf16.mxu0 %v6655_v29  ;;  %3402 = vmatprep.subr.bf16.mxu1 %v6658_v30  ;;  %v1105_v48 = vpop.f32.mrb[15].mxu0  ;;  %v1239_v5 = vpop.f32.mrb[15].mxu1 }
 0x137   : > { %3269 = vmatpush1.bf16.msra.mxu0 %v6653_v38  ;;  %3403 = vmatpush1.bf16.msra.mxu1 %v6656_v41  ;;  %v6721_v38 = vld [vmem:[%s8930_s1 + $0xae4] ss:$16 sps:$4 sm:$0xff]   ;;  %v6724_v41 = vld [vmem:[%s8930_s1 + $0xaec] ss:$16 sps:$4 sm:$0xff]  }
 0x138   : > { %3270 = vmatprep.subr.bf16.mxu0 %v6661_v44  ;;  %3404 = vmatprep.subr.bf16.mxu1 %v6664_v46  ;;  %v8248_v46 = vld [vmem:[%s7179_s7 + $0x60] ss:$16 sps:$4 sm:$0xff]  }
 0x13b   : > { %3271 = vmatpush1.bf16.msra.mxu0 %v6659_v49  ;;  %3405 = vmatpush1.bf16.msra.mxu1 %v6662_v50  ;;  %v6719_v50 = vld [vmem:[%s8930_s1 + $0xae0] ss:$16 sps:$4 sm:$0xff]  }
 0x13c   : > { %3272 = vmatprep.subr.bf16.mxu0 %v6667_v51  ;;  %3406 = vmatprep.subr.bf16.mxu1 %v6670_v14  ;;  %v6722_v51 = vld [vmem:[%s8930_s1 + $0xae8] ss:$16 sps:$4 sm:$0xff]  }
 0x13f   : > { %3273 = vmatpush1.bf16.msra.mxu0 %v6665_v52  ;;  %3407 = vmatpush1.bf16.msra.mxu1 %v6668_v54  ;;  %v6727_v52 = vld [vmem:[%s8930_s1 + $0xb04] ss:$16 sps:$4 sm:$0xff]   ;;  %v6730_v54 = vld [vmem:[%s8930_s1 + $0xb0c] ss:$16 sps:$4 sm:$0xff]  }
 0x140   : > { %3274 = vmatprep.subr.bf16.mxu0 %v6673_v13  ;;  %3408 = vmatprep.subr.bf16.mxu1 %v6676_v55 }
 0x143   : > { %3275 = vmatpush1.bf16.msra.mxu0 %v6671_v56  ;;  %3409 = vmatpush1.bf16.msra.mxu1 %v6674_v15  ;;  %v8265_v15 = vld [vmem:[%s7179_s7 + $0xc] ss:$16 sps:$4 sm:$0xff]  }
 0x144   : > { %3311 = vmatprep.subr.bf16.mxu0 %v6679_v20  ;;  %3445 = vmatprep.subr.bf16.mxu1 %v6682_v57 }
 0x146   : > { %3277 = vmatmul.mubr.bf16.vlgmr.msra.gmra.mrb[44].mxu0 %v8146_v60  ;;  %3411 = vmatmul.mubr.bf16.vlgmr.msra.gmra.mrb[40].mxu1 %v8146_v60 }
 0x147   : > { %3312 = vmatpush1.bf16.msra.mxu0 %v6677_v58  ;;  %3446 = vmatpush1.bf16.msra.mxu1 %v6680_v23 }
 0x148   : > { %3313 = vmatprep.subr.bf16.mxu0 %v6685_v27  ;;  %3447 = vmatprep.subr.bf16.mxu1 %v6688_v59  ;;  %v6725_v27 = vld [vmem:[%s8930_s1 + $0xb00] ss:$16 sps:$4 sm:$0xff]  }
 0x149   : > { %3282 = vmatprep.mubr.bf16.mxu0 %v8163_v47  ;;  %3416 = vmatprep.mubr.bf16.mxu1 %v8163_v47 }
 0x14b   : > { %3314 = vmatpush1.bf16.msra.mxu0 %v6683_v61  ;;  %3448 = vmatpush1.bf16.msra.mxu1 %v6686_v33 }
 0x14c   : > { %3315 = vmatprep.subr.bf16.mxu0 %v6691_v62  ;;  %3449 = vmatprep.subr.bf16.mxu1 %v6694_v25  ;;  %v6728_v62 = vld [vmem:[%s8930_s1 + $0xb08] ss:$16 sps:$4 sm:$0xff]  }
 0x14e   : > { %3283 = vmatmul.mubr.bf16.gmra.mrb[48].mxu0 %v8180_v45  ;;  %3417 = vmatmul.mubr.bf16.gmra.mrb[44].mxu1 %v8180_v45 }
 0x14f   : > { %3316 = vmatpush1.bf16.msra.mxu0 %v6689_v39  ;;  %3450 = vmatpush1.bf16.msra.mxu1 %v6692_v63 }
 0x150   : > { %3317 = vmatprep.subr.bf16.mxu0 %v6697_v31  ;;  %3451 = vmatprep.subr.bf16.mxu1 %v6700_v0  ;;  %v6733_v31 = vld [vmem:[%s8930_s1 + $0xb24] ss:$16 sps:$4 sm:$0xff]   ;;  %v6736_v0 = vld [vmem:[%s8930_s1 + $0xb2c] ss:$16 sps:$4 sm:$0xff]  }
 0x151   : > { %3292 = vmatprep.mubr.bf16.mxu0 %v8197_v53  ;;  %3426 = vmatprep.mubr.bf16.mxu1 %v8197_v53 }
 0x153   : > { %3318 = vmatpush1.bf16.msra.mxu0 %v6695_v1  ;;  %3452 = vmatpush1.bf16.msra.mxu1 %v6698_v2 }
 0x154   : > { %3319 = vmatprep.subr.bf16.mxu0 %v6703_v3  ;;  %3453 = vmatprep.subr.bf16.mxu1 %v6706_v35 }
 0x156   : > { %3293 = vmatmul.mubr.bf16.gmra.mrb[52].mxu0 %v8214_v9  ;;  %3427 = vmatmul.mubr.bf16.gmra.mrb[48].mxu1 %v8214_v9 }
 0x157   : > { %3320 = vmatpush1.bf16.msra.mxu0 %v6701_v6  ;;  %3454 = vmatpush1.bf16.msra.mxu1 %v6704_v40 }
 0x158   : > { %3321 = vmatprep.subr.bf16.mxu0 %v6709_v7  ;;  %3455 = vmatprep.subr.bf16.mxu1 %v6712_v8  ;;  %v6731_v7 = vld [vmem:[%s8930_s1 + $0xb20] ss:$16 sps:$4 sm:$0xff]   ;;  %v6734_v8 = vld [vmem:[%s8930_s1 + $0xb28] ss:$16 sps:$4 sm:$0xff]  }
 0x159   : > { %v1141_v19 = vpop.f32.mrb[0].mxu0  ;;  %v1275_v21 = vpop.f32.mrb[0].mxu1  ;;  %3302 = vmatprep.mubr.bf16.mxu0 %v8231_v22  ;;  %3436 = vmatprep.mubr.bf16.mxu1 %v8231_v22 }
 0x15a   : > { %v1143_v24 = vpop.f32.mrb[1].mxu0  ;;  %v1277_v26 = vpop.f32.mrb[1].mxu1  ;;  %v1338_v42 = vrot.slane %v1275_v21, 2 }
 0x15b   : > { %v1318_v29 = vrot.slane %v1143_v24, 1  ;;  %v1145_v30 = vpop.f32.mrb[2].mxu0  ;;  %v1279_v32 = vpop.f32.mrb[2].mxu1  ;;  %3322 = vmatpush1.bf16.msra.mxu0 %v6707_v10  ;;  %3456 = vmatpush1.bf16.msra.mxu1 %v6710_v11  ;;  %v1358_v48 = vrot.slane %v1277_v26, 3  ;;  %v6739_v11 = vld [vmem:[%s8930_s1 + $0xb44] ss:$16 sps:$4 sm:$0xff]  }
 0x15c   : > { %v1147_v36 = vpop.f32.mrb[3].mxu0  ;;  %v1281_v37 = vpop.f32.mrb[3].mxu1  ;;  %3323 = vmatprep.subr.bf16.mxu0 %v6715_v17  ;;  %3457 = vmatprep.subr.bf16.mxu1 %v6718_v18  ;;  %v1339_v5 = vrot.slane %v1279_v32, 2  ;;  %v6742_v17 = vld [vmem:[%s8930_s1 + $0xb4c] ss:$16 sps:$4 sm:$0xff]  }
 0x15d   : > { %v1328_v43 = vadd.f32 %v1318_v29, %v1141_v19  ;;  %v1319_v44 = vrot.slane %v1147_v36, 1  ;;  %v1359_v13 = vrot.slane %v1281_v37, 3  ;;  %v6737_v36 = vld [vmem:[%s8930_s1 + $0xb40] ss:$16 sps:$4 sm:$0xff]   ;;  %v6740_v37 = vld [vmem:[%s8930_s1 + $0xb48] ss:$16 sps:$4 sm:$0xff]  }
 0x15e   : > { %3303 = vmatmul.mubr.bf16.gmra.mrb[56].mxu0 %v8248_v46  ;;  %3437 = vmatmul.mubr.bf16.gmra.mrb[52].mxu1 %v8248_v46 }
 0x15f   : > { %v1329_v49 = vadd.f32 %v1319_v44, %v1145_v30  ;;  %3324 = vmatpush1.bf16.msra.mxu0 %v6713_v28  ;;  %3458 = vmatpush1.bf16.msra.mxu1 %v6716_v34  ;;  %v1348_v14 = vadd.f32 %v1338_v42, %v1328_v43 }
 0x160   : > { %3325 = vmatprep.subr.bf16.mxu0 %v6721_v38  ;;  %3459 = vmatprep.subr.bf16.mxu1 %v6724_v41 }
 0x161   : > { %v1151_v55 = vpop.f32.mrb[4].mxu0  ;;  %v1285_v56 = vpop.f32.mrb[4].mxu1  ;;  %3343 = vmatprep.mubr.bf16.mxu0 %v8265_v15  ;;  %3477 = vmatprep.mubr.bf16.mxu1 %v8265_v15  ;;  %v8269_v20 = vadd.f32 %v1358_v48, %v1348_v14  ;;  %v1349_v57 = vadd.f32 %v1339_v5, %v1329_v49  ;;  %v6743_v49 = vld [vmem:[%s8930_s1 + $0xb60] ss:$16 sps:$4 sm:$0xff]   ;;  %v6754_v14 = vld [vmem:[%s8930_s1 + $0xb8c] ss:$16 sps:$4 sm:$0xff]  }
 0x162   : > { %v1153_v58 = vpop.f32.mrb[5].mxu0  ;;  %v1287_v23 = vpop.f32.mrb[5].mxu1  ;;  %v1340_v1 = vrot.slane %v1285_v56, 2 }
 0x163   : > { %v1320_v59 = vrot.slane %v1153_v58, 1  ;;  %v1155_v61 = vpop.f32.mrb[6].mxu0  ;;  %v1289_v33 = vpop.f32.mrb[6].mxu1  ;;  %3326 = vmatpush1.bf16.msra.mxu0 %v6719_v50  ;;  %3460 = vmatpush1.bf16.msra.mxu1 %v6722_v51  ;;  %v8277_v25 = vadd.f32 %v1359_v13, %v1349_v57  ;;  %v1360_v35 = vrot.slane %v1287_v23, 3  ;;  %v6746_v50 = vld [vmem:[%s8930_s1 + $0xb68] ss:$16 sps:$4 sm:$0xff]  }
 0x164   : > { %v1157_v39 = vpop.f32.mrb[7].mxu0  ;;  %v1291_v63 = vpop.f32.mrb[7].mxu1  ;;  %3327 = vmatprep.subr.bf16.mxu0 %v6727_v52  ;;  %3461 = vmatprep.subr.bf16.mxu1 %v6730_v54  ;;  %v1341_v6 = vrot.slane %v1289_v33, 2  ;;  %v6751_v51 = vld [vmem:[%s8930_s1 + $0xb84] ss:$16 sps:$4 sm:$0xff]  }
 0x165   : > { %v1330_v2 = vadd.f32 %v1320_v59, %v1151_v55  ;;  %v1321_v3 = vrot.slane %v1157_v39, 1  ;;  %v1361_v18 = vrot.slane %v1291_v63, 3  ;;  %v6749_v58 = vld [vmem:[%s8930_s1 + $0xb80] ss:$16 sps:$4 sm:$0xff]   ;;  %v6752_v23 = vld [vmem:[%s8930_s1 + $0xb88] ss:$16 sps:$4 sm:$0xff]  }
 0x166   : > { %v6757_v33 = vld [vmem:[%s8930_s1 + $0xba4] ss:$16 sps:$4 sm:$0xff]  }
 0x167   : > { %v1331_v40 = vadd.f32 %v1321_v3, %v1155_v61  ;;  %3328 = vmatpush1.bf16.msra.mxu0 %v6725_v27  ;;  %3462 = vmatpush1.bf16.msra.mxu1 %v6728_v62  ;;  %v1350_v10 = vadd.f32 %v1340_v1, %v1330_v2  ;;  %v6760_v62 = vld [vmem:[%s8930_s1 + $0xbac] ss:$16 sps:$4 sm:$0xff]   ;;  %v6763_v1 = vld [vmem:[%s8930_s1 + $0xbc4] ss:$16 sps:$4 sm:$0xff]   ;;  %v6761_v3 = vld [vmem:[%s8930_s1 + $0xbc0] ss:$16 sps:$4 sm:$0xff]  }
 0x168   : > { %3329 = vmatprep.subr.bf16.mxu0 %v6733_v31  ;;  %3463 = vmatprep.subr.bf16.mxu1 %v6736_v0  ;;  %v6755_v31 = vld [vmem:[%s8930_s1 + $0xba0] ss:$16 sps:$4 sm:$0xff]   ;;  %v6758_v0 = vld [vmem:[%s8930_s1 + $0xba8] ss:$16 sps:$4 sm:$0xff]   ;;  %v6766_v2 = vld [vmem:[%s8930_s1 + $0xbcc] ss:$16 sps:$4 sm:$0xff]  }
 0x169   : > { %v1161_v19 = vpop.f32.mrb[16].mxu0  ;;  %v1295_v21 = vpop.f32.mrb[8].mxu1  ;;  %v8297_v24 = vadd.f32 %v1360_v35, %v1350_v10  ;;  %v1351_v26 = vadd.f32 %v1341_v6, %v1331_v40  ;;  %v6764_v35 = vld [vmem:[%s8930_s1 + $0xbc8] ss:$16 sps:$4 sm:$0xff]   ;;  %v6769_v6 = vld [vmem:[%s8930_s1 + $0xbe4] ss:$16 sps:$4 sm:$0xff]  }
 0x16a   : > { %v1162_v28 = vadd.f32 %v1161_v19, %v8057_v12  ;;  %v1163_v29 = vpop.f32.mrb[17].mxu0  ;;  %v1297_v30 = vpop.f32.mrb[9].mxu1  ;;  %v6745_v12 = vld [vmem:[%s8930_s1 + $0xb64] ss:$16 sps:$4 sm:$0xff]   ;;  %v1342_v48 = vrot.slane %v1295_v21, 2 }
 0x16b   : > { %v1164_v32 = vadd.f32 %v1163_v29, %v8059_v16  ;;  %v1299_v34 = vpop.f32.mrb[10].mxu1  ;;  %3330 = vmatpush1.bf16.msra.mxu0 %v6731_v7  ;;  %3464 = vmatpush1.bf16.msra.mxu1 %v6734_v8  ;;  %v1165_v38 = vpop.f32.mrb[18].mxu0  ;;  %v8307_v41 = vadd.f32 %v1361_v18, %v1351_v26  ;;  %v6748_v16 = vld [vmem:[%s8930_s1 + $0xb6c] ss:$16 sps:$4 sm:$0xff]   ;;  %v1362_v52 = vrot.slane %v1297_v30, 3 }
 0x16c   : > { %v1300_v42 = vpop.f32.mrb[11].mxu1  ;;  %3331 = vmatprep.subr.bf16.mxu0 %v6739_v11  ;;  %3465 = vmatprep.subr.bf16.mxu1 %v6742_v17  ;;  %v1166_v43 = vpop.f32.mrb[19].mxu0  ;;  %v6772_v40 = vld [vmem:[%s8930_s1 + $0xbec] ss:$16 sps:$4 sm:$0xff]   ;;  %v6767_v7 = vld [vmem:[%s8930_s1 + $0xbe0] ss:$16 sps:$4 sm:$0xff]  }
 0x16d   : > { %v1322_v44 = vrot.slane %v1164_v32, 1  ;;  %v6770_v8 = vld [vmem:[%s8930_s1 + $0xbe8] ss:$16 sps:$4 sm:$0xff]   ;;  %v6775_v10 = vld [vmem:[%s8930_s1 + $0xc04] ss:$16 sps:$4 sm:$0xff]  }
 0x16e   : > { %v6778_v11 = vld [vmem:[%s8930_s1 + $0xc0c] ss:$16 sps:$4 sm:$0xff]   ;;  %v6773_v17 = vld [vmem:[%s8930_s1 + $0xc00] ss:$16 sps:$4 sm:$0xff]   ;;  %v6776_v18 = vld [vmem:[%s8930_s1 + $0xc08] ss:$16 sps:$4 sm:$0xff]  }
 0x16f   : > { %v1332_v5 = vadd.f32 %v1322_v44, %v1162_v28  ;;  %3332 = vmatpush1.bf16.msra.mxu0 %v6737_v36  ;;  %3466 = vmatpush1.bf16.msra.mxu1 %v6740_v37  ;;  %v6781_v19 = vld [vmem:[%s8930_s1 + $0xc24] ss:$16 sps:$4 sm:$0xff]   ;;  %v6784_v21 = vld [vmem:[%s8930_s1 + $0xc2c] ss:$16 sps:$4 sm:$0xff]   ;;  %v8390_v26 = vld [vmem:[%s7179_s7 + $0x8] ss:$16 sps:$4 sm:$0xff]  }
 0x170   : > { %3333 = vmatprep.subr.bf16.mxu0 %v6745_v12  ;;  %3467 = vmatprep.subr.bf16.mxu1 %v6748_v16  ;;  %v6779_v28 = vld [vmem:[%s8930_s1 + $0xc20] ss:$16 sps:$4 sm:$0xff]   ;;  %v6782_v29 = vld [vmem:[%s8930_s1 + $0xc28] ss:$16 sps:$4 sm:$0xff]   ;;  %v6787_v30 = vld [vmem:[%s8930_s1 + $0xc44] ss:$16 sps:$4 sm:$0xff]  }
 0x171   : > { %v1169_v54 = vpop.f32.mrb[20].mxu0  ;;  %v1303_v13 = vpop.f32.mrb[16].mxu1  ;;  %v1352_v55 = vadd.f32 %v1342_v48, %v1332_v5  ;;  %v6790_v32 = vld [vmem:[%s8930_s1 + $0xc4c] ss:$16 sps:$4 sm:$0xff]   ;;  %v6785_v36 = vld [vmem:[%s8930_s1 + $0xc40] ss:$16 sps:$4 sm:$0xff]  }
 0x172   : > { %v1170_v56 = vpop.f32.mrb[21].mxu0  ;;  %v1304_v57 = vpop.f32.mrb[17].mxu1  ;;  %v8407_v34 = vld [vmem:[%s7179_s7 + $0x2c] ss:$16 sps:$4 sm:$0xff]   ;;  %v6788_v37 = vld [vmem:[%s8930_s1 + $0xc48] ss:$16 sps:$4 sm:$0xff]  }
 0x173   : > { %3334 = vmatpush1.bf16.msra.mxu0 %v6743_v49  ;;  %3468 = vmatpush1.bf16.msra.mxu1 %v6746_v50  ;;  %v1171_v27 = vpop.f32.mrb[22].mxu0  ;;  %v1305_v59 = vpop.f32.mrb[18].mxu1  ;;  %v8333_v61 = vadd.f32 %v1362_v52, %v1352_v55  ;;  %v6793_v38 = vld [vmem:[%s8930_s1 + $0xc64] ss:$16 sps:$4 sm:$0xff]   ;;  %v6796_v42 = vld [vmem:[%s8930_s1 + $0xc6c] ss:$16 sps:$4 sm:$0xff]  }
 0x174   : > { %3335 = vmatprep.subr.bf16.mxu0 %v6751_v51  ;;  %3469 = vmatprep.subr.bf16.mxu1 %v6754_v14  ;;  %v1172_v39 = vpop.f32.mrb[23].mxu0  ;;  %v1306_v63 = vpop.f32.mrb[19].mxu1  ;;  %v8424_v12 = vld [vmem:[%s7179_s7 + $0x28] ss:$16 sps:$4 sm:$0xff]   ;;  %v6791_v16 = vld [vmem:[%s8930_s1 + $0xc60] ss:$16 sps:$4 sm:$0xff]  }
 0x175   : > { %v6794_v43 = vld [vmem:[%s8930_s1 + $0xc68] ss:$16 sps:$4 sm:$0xff]   ;;  %v6799_v44 = vld [vmem:[%s8930_s1 + $0xc84] ss:$16 sps:$4 sm:$0xff]   ;;  %v6802_v48 = vld [vmem:[%s8930_s1 + $0xc8c] ss:$16 sps:$4 sm:$0xff]  }
 0x176   : > { %v8441_v5 = vld [vmem:[%s7179_s7 + $0x4c] ss:$16 sps:$4 sm:$0xff]   ;;  %v6797_v49 = vld [vmem:[%s8930_s1 + $0xc80] ss:$16 sps:$4 sm:$0xff]   ;;  %v6800_v50 = vld [vmem:[%s8930_s1 + $0xc88] ss:$16 sps:$4 sm:$0xff]  }
 0x177   : > { %3336 = vmatpush1.bf16.msra.mxu0 %v6749_v58  ;;  %3470 = vmatpush1.bf16.msra.mxu1 %v6752_v23  ;;  %v6805_v51 = vld [vmem:[%s8930_s1 + $0xca4] ss:$16 sps:$4 sm:$0xff]   ;;  %v6808_v14 = vld [vmem:[%s8930_s1 + $0xcac] ss:$16 sps:$4 sm:$0xff]   ;;  %v8458_v52 = vld [vmem:[%s7179_s7 + $0x48] ss:$16 sps:$4 sm:$0xff]  }
 0x178   : > { %3337 = vmatprep.subr.bf16.mxu0 %v6757_v33  ;;  %3471 = vmatprep.subr.bf16.mxu1 %v6760_v62  ;;  %v6803_v54 = vld [vmem:[%s8930_s1 + $0xca0] ss:$16 sps:$4 sm:$0xff]   ;;  %v6806_v13 = vld [vmem:[%s8930_s1 + $0xca8] ss:$16 sps:$4 sm:$0xff]   ;;  %v6811_v55 = vld [vmem:[%s8930_s1 + $0xcc4] ss:$16 sps:$4 sm:$0xff]  }
 0x179   : > { %v6814_v56 = vld [vmem:[%s8930_s1 + $0xccc] ss:$16 sps:$4 sm:$0xff]   ;;  %v6809_v58 = vld [vmem:[%s8930_s1 + $0xcc0] ss:$16 sps:$4 sm:$0xff]   ;;  %v6812_v23 = vld [vmem:[%s8930_s1 + $0xcc8] ss:$16 sps:$4 sm:$0xff]  }
 0x17a   : > { %v8475_v57 = vld [vmem:[%s7179_s7 + $0x6c] ss:$16 sps:$4 sm:$0xff]   ;;  %v6817_v27 = vld [vmem:[%s8930_s1 + $0xce4] ss:$16 sps:$4 sm:$0xff]   ;;  %v8492_v33 = vld [vmem:[%s7179_s7 + $0x68] ss:$16 sps:$4 sm:$0xff]  }
 0x17b   : > { %3338 = vmatpush1.bf16.msra.mxu0 %v6755_v31  ;;  %3472 = vmatpush1.bf16.msra.mxu1 %v6758_v0  ;;  %v6820_v59 = vld [vmem:[%s8930_s1 + $0xcec] ss:$16 sps:$4 sm:$0xff]   ;;  %v6815_v62 = vld [vmem:[%s8930_s1 + $0xce0] ss:$16 sps:$4 sm:$0xff]   ;;  %v6818_v39 = vld [vmem:[%s8930_s1 + $0xce8] ss:$16 sps:$4 sm:$0xff]  }
 0x17c   : > { %3339 = vmatprep.subr.bf16.mxu0 %v6763_v1  ;;  %3473 = vmatprep.subr.bf16.mxu1 %v6766_v2  ;;  %v6823_v63 = vld [vmem:[%s8930_s1 + $0xd04] ss:$16 sps:$4 sm:$0xff]   ;;  %v6826_v31 = vld [vmem:[%s8930_s1 + $0xd0c] ss:$16 sps:$4 sm:$0xff]   ;;  %v6821_v0 = vld [vmem:[%s8930_s1 + $0xd00] ss:$16 sps:$4 sm:$0xff]  }
 0x17d   : > { %v6824_v1 = vld [vmem:[%s8930_s1 + $0xd08] ss:$16 sps:$4 sm:$0xff]   ;;  %v6829_v2 = vld [vmem:[%s8930_s1 + $0xd24] ss:$16 sps:$4 sm:$0xff]  }
 0x17f   : > { %3340 = vmatpush1.bf16.msra.mxu0 %v6761_v3  ;;  %3474 = vmatpush1.bf16.msra.mxu1 %v6764_v35  ;;  %v6827_v3 = vld [vmem:[%s8930_s1 + $0xd20] ss:$16 sps:$4 sm:$0xff]   ;;  %v6830_v35 = vld [vmem:[%s8930_s1 + $0xd28] ss:$16 sps:$4 sm:$0xff]  }
 0x180   : > { %3341 = vmatprep.subr.bf16.mxu0 %v6769_v6  ;;  %3475 = vmatprep.subr.bf16.mxu1 %v6772_v40  ;;  %v6835_v6 = vld [vmem:[%s8930_s1 + $0xd44] ss:$16 sps:$4 sm:$0xff]   ;;  %v6838_v40 = vld [vmem:[%s8930_s1 + $0xd4c] ss:$16 sps:$4 sm:$0xff]  }
 0x183   : > { %3342 = vmatpush1.bf16.msra.mxu0 %v6767_v7  ;;  %3476 = vmatpush1.bf16.msra.mxu1 %v6770_v8  ;;  %v6833_v7 = vld [vmem:[%s8930_s1 + $0xd40] ss:$16 sps:$4 sm:$0xff]   ;;  %v6836_v8 = vld [vmem:[%s8930_s1 + $0xd48] ss:$16 sps:$4 sm:$0xff]  }
 0x184   : > { %4346 = vmatprep.subr.bf16.mxu0 %v6775_v10  ;;  %4480 = vmatprep.subr.bf16.mxu1 %v6778_v11  ;;  %v6841_v10 = vld [vmem:[%s8930_s1 + $0xd64] ss:$16 sps:$4 sm:$0xff]   ;;  %v6844_v11 = vld [vmem:[%s8930_s1 + $0xd6c] ss:$16 sps:$4 sm:$0xff]  }
 0x186   : > { %3344 = vmatmul.mubr.bf16.vlgmr.msra.gmra.mrb[60].mxu0 %v8390_v26  ;;  %3478 = vmatmul.mubr.bf16.vlgmr.msra.gmra.mrb[56].mxu1 %v8390_v26 }
 0x187   : > { %4347 = vmatpush1.bf16.msra.mxu0 %v6773_v17  ;;  %4481 = vmatpush1.bf16.msra.mxu1 %v6776_v18  ;;  %v6839_v17 = vld [vmem:[%s8930_s1 + $0xd60] ss:$16 sps:$4 sm:$0xff]   ;;  %v6842_v18 = vld [vmem:[%s8930_s1 + $0xd68] ss:$16 sps:$4 sm:$0xff]  }
 0x188   : > { %4348 = vmatprep.subr.bf16.mxu0 %v6781_v19  ;;  %4482 = vmatprep.subr.bf16.mxu1 %v6784_v21  ;;  %v6847_v19 = vld [vmem:[%s8930_s1 + $0xd84] ss:$16 sps:$4 sm:$0xff]   ;;  %v6850_v21 = vld [vmem:[%s8930_s1 + $0xd8c] ss:$16 sps:$4 sm:$0xff]  }
 0x189   : > { %3349 = vmatprep.mubr.bf16.mxu0 %v8407_v34  ;;  %3483 = vmatprep.mubr.bf16.mxu1 %v8407_v34 }
 0x18b   : > { %4349 = vmatpush1.bf16.msra.mxu0 %v6779_v28  ;;  %4483 = vmatpush1.bf16.msra.mxu1 %v6782_v29 }
 0x18c   : > { %4350 = vmatprep.subr.bf16.mxu0 %v6787_v30  ;;  %4484 = vmatprep.subr.bf16.mxu1 %v6790_v32 }
 0x18e   : > { %3350 = vmatmul.mubr.bf16.gmra.mrb[48].mxu0 %v8424_v12  ;;  %3484 = vmatmul.mubr.bf16.gmra.mrb[44].mxu1 %v8424_v12 }
 0x18f   : > { %4351 = vmatpush1.bf16.msra.mxu0 %v6785_v36  ;;  %4485 = vmatpush1.bf16.msra.mxu1 %v6788_v37  ;;  %v6845_v36 = vld [vmem:[%s8930_s1 + $0xd80] ss:$16 sps:$4 sm:$0xff]   ;;  %v6848_v37 = vld [vmem:[%s8930_s1 + $0xd88] ss:$16 sps:$4 sm:$0xff]  }
 0x190   : > { %4352 = vmatprep.subr.bf16.mxu0 %v6793_v38  ;;  %4486 = vmatprep.subr.bf16.mxu1 %v6796_v42 }
 0x191   : > { %3359 = vmatprep.mubr.bf16.mxu0 %v8441_v5  ;;  %3493 = vmatprep.mubr.bf16.mxu1 %v8441_v5 }
 0x193   : > { %4353 = vmatpush1.bf16.msra.mxu0 %v6791_v16  ;;  %4487 = vmatpush1.bf16.msra.mxu1 %v6794_v43  ;;  %v6853_v16 = vld [vmem:[%s8930_s1 + $0xda4] ss:$16 sps:$4 sm:$0xff]   ;;  %v6856_v43 = vld [vmem:[%s8930_s1 + $0xdac] ss:$16 sps:$4 sm:$0xff]  }
 0x194   : > { %4354 = vmatprep.subr.bf16.mxu0 %v6799_v44  ;;  %4488 = vmatprep.subr.bf16.mxu1 %v6802_v48 }
 0x196   : > { %3360 = vmatmul.mubr.bf16.gmra.mrb[52].mxu0 %v8458_v52  ;;  %3494 = vmatmul.mubr.bf16.gmra.mrb[48].mxu1 %v8458_v52 }
 0x197   : > { %4355 = vmatpush1.bf16.msra.mxu0 %v6797_v49  ;;  %4489 = vmatpush1.bf16.msra.mxu1 %v6800_v50  ;;  %v6851_v49 = vld [vmem:[%s8930_s1 + $0xda0] ss:$16 sps:$4 sm:$0xff]   ;;  %v6854_v50 = vld [vmem:[%s8930_s1 + $0xda8] ss:$16 sps:$4 sm:$0xff]  }
 0x198   : > { %4356 = vmatprep.subr.bf16.mxu0 %v6805_v51  ;;  %4490 = vmatprep.subr.bf16.mxu1 %v6808_v14  ;;  %v6859_v51 = vld [vmem:[%s8930_s1 + $0xdc4] ss:$16 sps:$4 sm:$0xff]   ;;  %v6862_v14 = vld [vmem:[%s8930_s1 + $0xdcc] ss:$16 sps:$4 sm:$0xff]  }
 0x199   : > { %3369 = vmatprep.mubr.bf16.mxu0 %v8475_v57  ;;  %3503 = vmatprep.mubr.bf16.mxu1 %v8475_v57 }
 0x19b   : > { %4357 = vmatpush1.bf16.msra.mxu0 %v6803_v54  ;;  %4491 = vmatpush1.bf16.msra.mxu1 %v6806_v13  ;;  %v6857_v54 = vld [vmem:[%s8930_s1 + $0xdc0] ss:$16 sps:$4 sm:$0xff]   ;;  %v6860_v13 = vld [vmem:[%s8930_s1 + $0xdc8] ss:$16 sps:$4 sm:$0xff]  }
 0x19c   : > { %4358 = vmatprep.subr.bf16.mxu0 %v6811_v55  ;;  %4492 = vmatprep.subr.bf16.mxu1 %v6814_v56  ;;  %v6865_v55 = vld [vmem:[%s8930_s1 + $0xde4] ss:$16 sps:$4 sm:$0xff]   ;;  %v6868_v56 = vld [vmem:[%s8930_s1 + $0xdec] ss:$16 sps:$4 sm:$0xff]  }
 0x19e   : > { %3370 = vmatmul.mubr.bf16.gmra.mrb[64].mxu0 %v8492_v33  ;;  %3504 = vmatmul.mubr.bf16.gmra.mrb[52].mxu1 %v8492_v33 }
 0x19f   : > { %4359 = vmatpush1.bf16.msra.mxu0 %v6809_v58  ;;  %4493 = vmatpush1.bf16.msra.mxu1 %v6812_v23  ;;  %v6863_v58 = vld [vmem:[%s8930_s1 + $0xde0] ss:$16 sps:$4 sm:$0xff]   ;;  %v6866_v23 = vld [vmem:[%s8930_s1 + $0xde8] ss:$16 sps:$4 sm:$0xff]  }
 0x1a0   : > { %4360 = vmatprep.subr.bf16.mxu0 %v6817_v27  ;;  %4494 = vmatprep.subr.bf16.mxu1 %v6820_v59  ;;  %v6871_v27 = vld [vmem:[%s8930_s1 + $0xe04] ss:$16 sps:$4 sm:$0xff]   ;;  %v6874_v59 = vld [vmem:[%s8930_s1 + $0xe0c] ss:$16 sps:$4 sm:$0xff]  }
 0x1a1   : > { %4378 = vmatprep.mubr.bf16.mxu0 %v8029_v4  ;;  %4512 = vmatprep.mubr.bf16.mxu1 %v8029_v4  ;;  %v6832_v4 = vld [vmem:[%s8930_s1 + $0xd2c] ss:$16 sps:$4 sm:$0xff]  }
 0x1a3   : > { %4361 = vmatpush1.bf16.msra.mxu0 %v6815_v62  ;;  %4495 = vmatpush1.bf16.msra.mxu1 %v6818_v39  ;;  %v6869_v62 = vld [vmem:[%s8930_s1 + $0xe00] ss:$16 sps:$4 sm:$0xff]   ;;  %v6872_v39 = vld [vmem:[%s8930_s1 + $0xe08] ss:$16 sps:$4 sm:$0xff]  }
 0x1a4   : > { %4362 = vmatprep.subr.bf16.mxu0 %v6823_v63  ;;  %4496 = vmatprep.subr.bf16.mxu1 %v6826_v31  ;;  %v6877_v63 = vld [vmem:[%s8930_s1 + $0xe24] ss:$16 sps:$4 sm:$0xff]   ;;  %v6880_v31 = vld [vmem:[%s8930_s1 + $0xe2c] ss:$16 sps:$4 sm:$0xff]  }
 0x1a7   : > { %4363 = vmatpush1.bf16.msra.mxu0 %v6821_v0  ;;  %4497 = vmatpush1.bf16.msra.mxu1 %v6824_v1  ;;  %v6875_v0 = vld [vmem:[%s8930_s1 + $0xe20] ss:$16 sps:$4 sm:$0xff]   ;;  %v6878_v1 = vld [vmem:[%s8930_s1 + $0xe28] ss:$16 sps:$4 sm:$0xff]  }
 0x1a8   : > { %4364 = vmatprep.subr.bf16.mxu0 %v6829_v2  ;;  %4498 = vmatprep.subr.bf16.mxu1 %v6832_v4  ;;  %v6883_v2 = vld [vmem:[%s8930_s1 + $0xe44] ss:$16 sps:$4 sm:$0xff]   ;;  %v6881_v4 = vld [vmem:[%s8930_s1 + $0xe40] ss:$16 sps:$4 sm:$0xff]  }
 0x1ab   : > { %4365 = vmatpush1.bf16.msra.mxu0 %v6827_v3  ;;  %4499 = vmatpush1.bf16.msra.mxu1 %v6830_v35  ;;  %v6884_v3 = vld [vmem:[%s8930_s1 + $0xe48] ss:$16 sps:$4 sm:$0xff]   ;;  %v6889_v35 = vld [vmem:[%s8930_s1 + $0xe64] ss:$16 sps:$4 sm:$0xff]  }
 0x1ac   : > { %4366 = vmatprep.subr.bf16.mxu0 %v6835_v6  ;;  %4500 = vmatprep.subr.bf16.mxu1 %v6838_v40  ;;  %v6887_v6 = vld [vmem:[%s8930_s1 + $0xe60] ss:$16 sps:$4 sm:$0xff]   ;;  %v6890_v40 = vld [vmem:[%s8930_s1 + $0xe68] ss:$16 sps:$4 sm:$0xff]  }
 0x1af   : > { %4367 = vmatpush1.bf16.msra.mxu0 %v6833_v7  ;;  %4501 = vmatpush1.bf16.msra.mxu1 %v6836_v8  ;;  %v6895_v7 = vld [vmem:[%s8930_s1 + $0xe84] ss:$16 sps:$4 sm:$0xff]   ;;  %v6893_v8 = vld [vmem:[%s8930_s1 + $0xe80] ss:$16 sps:$4 sm:$0xff]  }
 0x1b0   : > { %4368 = vmatprep.subr.bf16.mxu0 %v6841_v10  ;;  %4502 = vmatprep.subr.bf16.mxu1 %v6844_v11  ;;  %v6896_v10 = vld [vmem:[%s8930_s1 + $0xe88] ss:$16 sps:$4 sm:$0xff]   ;;  %v6901_v11 = vld [vmem:[%s8930_s1 + $0xea4] ss:$16 sps:$4 sm:$0xff]  }
 0x1b1   : > { %v2204_v28 = vpop.f32.mrb[36].mxu0  ;;  %v2338_v29 = vpop.f32.mrb[32].mxu1 }
 0x1b2   : > { %v2205_v30 = vpop.f32.mrb[37].mxu0  ;;  %v2339_v32 = vpop.f32.mrb[33].mxu1 }
 0x1b3   : > { %4369 = vmatpush1.bf16.msra.mxu0 %v6839_v17  ;;  %4503 = vmatpush1.bf16.msra.mxu1 %v6842_v18  ;;  %v2206_v38 = vpop.f32.mrb[38].mxu0  ;;  %v2340_v42 = vpop.f32.mrb[34].mxu1  ;;  %v6899_v17 = vld [vmem:[%s8930_s1 + $0xea0] ss:$16 sps:$4 sm:$0xff]   ;;  %v6902_v18 = vld [vmem:[%s8930_s1 + $0xea8] ss:$16 sps:$4 sm:$0xff]  }
 0x1b4   : > { %4370 = vmatprep.subr.bf16.mxu0 %v6847_v19  ;;  %4504 = vmatprep.subr.bf16.mxu1 %v6850_v21  ;;  %v2207_v44 = vpop.f32.mrb[39].mxu0  ;;  %v2341_v48 = vpop.f32.mrb[35].mxu1  ;;  %v6907_v19 = vld [vmem:[%s8930_s1 + $0xec4] ss:$16 sps:$4 sm:$0xff]   ;;  %v6908_v38 = vld [vmem:[%s8930_s1 + $0xec8] ss:$16 sps:$4 sm:$0xff]  }
 0x1b5   : > { %v6916_v44 = vld [vmem:[%s8930_s1 + $0xeec] ss:$16 sps:$4 sm:$0xff]  }
 0x1b7   : > { %4371 = vmatpush1.bf16.msra.mxu0 %v6845_v36  ;;  %4505 = vmatpush1.bf16.msra.mxu1 %v6848_v37  ;;  %v6905_v37 = vld [vmem:[%s8930_s1 + $0xec0] ss:$16 sps:$4 sm:$0xff]  }
 0x1b8   : > { %4372 = vmatprep.subr.bf16.mxu0 %v6853_v16  ;;  %4506 = vmatprep.subr.bf16.mxu1 %v6856_v43 }
 0x1bb   : > { %4373 = vmatpush1.bf16.msra.mxu0 %v6851_v49  ;;  %4507 = vmatpush1.bf16.msra.mxu1 %v6854_v50 }
 0x1bc   : > { %4374 = vmatprep.subr.bf16.mxu0 %v6859_v51  ;;  %4508 = vmatprep.subr.bf16.mxu1 %v6862_v14  ;;  %v6914_v51 = vld [vmem:[%s8930_s1 + $0xee8] ss:$16 sps:$4 sm:$0xff]   ;;  %v6919_v14 = vld [vmem:[%s8930_s1 + $0xf04] ss:$16 sps:$4 sm:$0xff]  }
 0x1bf   : > { %4375 = vmatpush1.bf16.msra.mxu0 %v6857_v54  ;;  %4509 = vmatpush1.bf16.msra.mxu1 %v6860_v13 }
 0x1c0   : > { %4376 = vmatprep.subr.bf16.mxu0 %v6865_v55  ;;  %4510 = vmatprep.subr.bf16.mxu1 %v6868_v56 }
 0x1c3   : > { %4377 = vmatpush1.bf16.msra.mxu0 %v6863_v58  ;;  %4511 = vmatpush1.bf16.msra.mxu1 %v6866_v23 }
 0x1c4   : > { %4413 = vmatprep.subr.bf16.mxu0 %v6871_v27  ;;  %4547 = vmatprep.subr.bf16.mxu1 %v6874_v59  ;;  %v6917_v59 = vld [vmem:[%s8930_s1 + $0xf00] ss:$16 sps:$4 sm:$0xff]  }
 0x1c6   : > { %4379 = vmatmul.mubr.bf16.vlgmr.msra.gmra.mrb[68].mxu0 %v8146_v60  ;;  %4513 = vmatmul.mubr.bf16.vlgmr.msra.gmra.mrb[60].mxu1 %v8146_v60  ;;  %v6886_v60 = vld [vmem:[%s8930_s1 + $0xe4c] ss:$16 sps:$4 sm:$0xff]  }
 0x1c7   : > { %4414 = vmatpush1.bf16.msra.mxu0 %v6869_v62  ;;  %4548 = vmatpush1.bf16.msra.mxu1 %v6872_v39 }
 0x1c8   : > { %4415 = vmatprep.subr.bf16.mxu0 %v6877_v63  ;;  %4549 = vmatprep.subr.bf16.mxu1 %v6880_v31  ;;  %v6920_v31 = vld [vmem:[%s8930_s1 + $0xf08] ss:$16 sps:$4 sm:$0xff]  }
 0x1c9   : > { %4384 = vmatprep.mubr.bf16.mxu0 %v8163_v47  ;;  %4518 = vmatprep.mubr.bf16.mxu1 %v8163_v47  ;;  %v6892_v47 = vld [vmem:[%s8930_s1 + $0xe6c] ss:$16 sps:$4 sm:$0xff]  }
 0x1cb   : > { %4416 = vmatpush1.bf16.msra.mxu0 %v6875_v0  ;;  %4550 = vmatpush1.bf16.msra.mxu1 %v6878_v1 }
 0x1cc   : > { %4417 = vmatprep.subr.bf16.mxu0 %v6883_v2  ;;  %4551 = vmatprep.subr.bf16.mxu1 %v6886_v60  ;;  %v6925_v2 = vld [vmem:[%s8930_s1 + $0xf24] ss:$16 sps:$4 sm:$0xff]   ;;  %v6928_v60 = vld [vmem:[%s8930_s1 + $0xf2c] ss:$16 sps:$4 sm:$0xff]  }
 0x1ce   : > { %4385 = vmatmul.mubr.bf16.gmra.mrb[72].mxu0 %v8180_v45  ;;  %4519 = vmatmul.mubr.bf16.gmra.mrb[64].mxu1 %v8180_v45  ;;  %v6898_v45 = vld [vmem:[%s8930_s1 + $0xe8c] ss:$16 sps:$4 sm:$0xff]  }
 0x1cf   : > { %4418 = vmatpush1.bf16.msra.mxu0 %v6881_v4  ;;  %4552 = vmatpush1.bf16.msra.mxu1 %v6884_v3 }
 0x1d0   : > { %4419 = vmatprep.subr.bf16.mxu0 %v6889_v35  ;;  %4553 = vmatprep.subr.bf16.mxu1 %v6892_v47 }
 0x1d1   : > { %4392 = vmatprep.mubr.bf16.mxu0 %v8197_v53  ;;  %4526 = vmatprep.mubr.bf16.mxu1 %v8197_v53  ;;  %v6904_v53 = vld [vmem:[%s8930_s1 + $0xeac] ss:$16 sps:$4 sm:$0xff]  }
 0x1d3   : > { %4420 = vmatpush1.bf16.msra.mxu0 %v6887_v6  ;;  %4554 = vmatpush1.bf16.msra.mxu1 %v6890_v40 }
 0x1d4   : > { %4421 = vmatprep.subr.bf16.mxu0 %v6895_v7  ;;  %4555 = vmatprep.subr.bf16.mxu1 %v6898_v45  ;;  %v6926_v7 = vld [vmem:[%s8930_s1 + $0xf28] ss:$16 sps:$4 sm:$0xff]  }
 0x1d6   : > { %4393 = vmatmul.mubr.bf16.gmra.mrb[76].mxu0 %v8214_v9  ;;  %4527 = vmatmul.mubr.bf16.gmra.mrb[68].mxu1 %v8214_v9  ;;  %v6910_v9 = vld [vmem:[%s8930_s1 + $0xecc] ss:$16 sps:$4 sm:$0xff]  }
 0x1d7   : > { %4422 = vmatpush1.bf16.msra.mxu0 %v6893_v8  ;;  %4556 = vmatpush1.bf16.msra.mxu1 %v6896_v10  ;;  %v6931_v8 = vld [vmem:[%s8930_s1 + $0xf44] ss:$16 sps:$4 sm:$0xff]   ;;  %v6934_v10 = vld [vmem:[%s8930_s1 + $0xf4c] ss:$16 sps:$4 sm:$0xff]  }
 0x1d8   : > { %4423 = vmatprep.subr.bf16.mxu0 %v6901_v11  ;;  %4557 = vmatprep.subr.bf16.mxu1 %v6904_v53 }
 0x1d9   : > { %v2243_v21 = vpop.f32.mrb[24].mxu0  ;;  %v2377_v28 = vpop.f32.mrb[20].mxu1  ;;  %4402 = vmatprep.mubr.bf16.mxu0 %v8231_v22  ;;  %4536 = vmatprep.mubr.bf16.mxu1 %v8231_v22  ;;  %v6913_v22 = vld [vmem:[%s8930_s1 + $0xee4] ss:$16 sps:$4 sm:$0xff]  }
 0x1da   : > { %v2244_v29 = vpop.f32.mrb[25].mxu0  ;;  %v2378_v30 = vpop.f32.mrb[21].mxu1 }
 0x1db   : > { %v2245_v32 = vpop.f32.mrb[26].mxu0  ;;  %v2379_v36 = vpop.f32.mrb[22].mxu1  ;;  %4424 = vmatpush1.bf16.msra.mxu0 %v6899_v17  ;;  %4558 = vmatpush1.bf16.msra.mxu1 %v6902_v18  ;;  %v6929_v29 = vld [vmem:[%s8930_s1 + $0xf40] ss:$16 sps:$4 sm:$0xff]  }
 0x1dc   : > { %v2410_v42 = vadd.f32 %v2245_v32, %v8269_v20  ;;  %v2247_v16 = vpop.f32.mrb[27].mxu0  ;;  %v2381_v43 = vpop.f32.mrb[23].mxu1  ;;  %4425 = vmatprep.subr.bf16.mxu0 %v6907_v19  ;;  %4559 = vmatprep.subr.bf16.mxu1 %v6910_v9  ;;  %v2440_v49 = vrot.slane %v2379_v36, 2  ;;  %v6911_v20 = vld [vmem:[%s8930_s1 + $0xee0] ss:$16 sps:$4 sm:$0xff]  }
 0x1dd   : > { %v2420_v48 = vrot.slane %v2247_v16, 1  ;;  %v2460_v54 = vrot.slane %v2381_v43, 3  ;;  %v6937_v43 = vld [vmem:[%s8930_s1 + $0xf64] ss:$16 sps:$4 sm:$0xff]  }
 0x1de   : > { %4403 = vmatmul.mubr.bf16.gmra.mrb[80].mxu0 %v8248_v46  ;;  %4537 = vmatmul.mubr.bf16.gmra.mrb[72].mxu1 %v8248_v46  ;;  %v6922_v46 = vld [vmem:[%s8930_s1 + $0xf0c] ss:$16 sps:$4 sm:$0xff]  }
 0x1df   : > { %v2430_v50 = vadd.f32 %v2420_v48, %v2410_v42  ;;  %4426 = vmatpush1.bf16.msra.mxu0 %v6905_v37  ;;  %4560 = vmatpush1.bf16.msra.mxu1 %v6908_v38  ;;  %v6932_v37 = vld [vmem:[%s8930_s1 + $0xf48] ss:$16 sps:$4 sm:$0xff]  }
 0x1e0   : > { %4427 = vmatprep.subr.bf16.mxu0 %v6913_v22  ;;  %4561 = vmatprep.subr.bf16.mxu1 %v6916_v44  ;;  %v6940_v22 = vld [vmem:[%s8930_s1 + $0xf6c] ss:$16 sps:$4 sm:$0xff]  }
 0x1e1   : > { %v2251_v13 = vpop.f32.mrb[28].mxu0  ;;  %v2385_v55 = vpop.f32.mrb[24].mxu1  ;;  %4445 = vmatprep.mubr.bf16.mxu0 %v8265_v15  ;;  %4579 = vmatprep.mubr.bf16.mxu1 %v8265_v15  ;;  %v2450_v56 = vadd.f32 %v2440_v49, %v2430_v50 }
 0x1e2   : > { %v2411_v58 = vadd.f32 %v2251_v13, %v8277_v25  ;;  %v2253_v23 = vpop.f32.mrb[29].mxu0  ;;  %v2387_v27 = vpop.f32.mrb[25].mxu1  ;;  %v2441_v4 = vrot.slane %v2385_v55, 2  ;;  %v6946_v13 = vld [vmem:[%s8930_s1 + $0xf8c] ss:$16 sps:$4 sm:$0xff]  }
 0x1e3   : > { %v2421_v62 = vrot.slane %v2253_v23, 1  ;;  %v2255_v39 = vpop.f32.mrb[30].mxu0  ;;  %v2389_v63 = vpop.f32.mrb[26].mxu1  ;;  %4428 = vmatpush1.bf16.msra.mxu0 %v6911_v20  ;;  %4562 = vmatpush1.bf16.msra.mxu1 %v6914_v51  ;;  %v8726_v0 = vadd.f32 %v2460_v54, %v2450_v56  ;;  %v2461_v47 = vrot.slane %v2387_v27, 3  ;;  %v6943_v54 = vld [vmem:[%s8930_s1 + $0xf84] ss:$16 sps:$4 sm:$0xff]  }
 0x1e4   : > { %v2412_v15 = vadd.f32 %v2255_v39, %v8297_v24  ;;  %v2257_v25 = vpop.f32.mrb[31].mxu0  ;;  %v2391_v1 = vpop.f32.mrb[27].mxu1  ;;  %4429 = vmatprep.subr.bf16.mxu0 %v6919_v14  ;;  %4563 = vmatprep.subr.bf16.mxu1 %v6922_v46  ;;  %v2442_v6 = vrot.slane %v2389_v63, 2  ;;  %v6923_v24 = vld [vmem:[%s8930_s1 + $0xf20] ss:$16 sps:$4 sm:$0xff]  }
 0x1e5   : > { %v2431_v3 = vadd.f32 %v2421_v62, %v2411_v58  ;;  %v2422_v35 = vrot.slane %v2257_v25, 1  ;;  %v2462_v11 = vrot.slane %v2391_v1, 3  ;;  %v6938_v14 = vld [vmem:[%s8930_s1 + $0xf68] ss:$16 sps:$4 sm:$0xff]   ;;  %v6941_v63 = vld [vmem:[%s8930_s1 + $0xf80] ss:$16 sps:$4 sm:$0xff]  }
 0x1e6   : > { %v6949_v1 = vld [vmem:[%s8930_s1 + $0xfa4] ss:$16 sps:$4 sm:$0xff]  }
 0x1e7   : > { %v2432_v40 = vadd.f32 %v2422_v35, %v2412_v15  ;;  %4430 = vmatpush1.bf16.msra.mxu0 %v6917_v59  ;;  %4564 = vmatpush1.bf16.msra.mxu1 %v6920_v31  ;;  %v2451_v45 = vadd.f32 %v2441_v4, %v2431_v3  ;;  %v6944_v31 = vld [vmem:[%s8930_s1 + $0xf88] ss:$16 sps:$4 sm:$0xff]   ;;  %v6947_v3 = vld [vmem:[%s8930_s1 + $0xfa0] ss:$16 sps:$4 sm:$0xff]  }
 0x1e8   : > { %4431 = vmatprep.subr.bf16.mxu0 %v6925_v2  ;;  %4565 = vmatprep.subr.bf16.mxu1 %v6928_v60  ;;  %v6952_v2 = vld [vmem:[%s8930_s1 + $0xfac] ss:$16 sps:$4 sm:$0xff]   ;;  %v6950_v35 = vld [vmem:[%s8930_s1 + $0xfa8] ss:$16 sps:$4 sm:$0xff]  }
 0x1e9   : > { %v2261_v53 = vpop.f32.mrb[32].mxu0  ;;  %v2395_v17 = vpop.f32.mrb[28].mxu1  ;;  %v8747_v18 = vadd.f32 %v2461_v47, %v2451_v45  ;;  %v2452_v19 = vadd.f32 %v2442_v6, %v2432_v40  ;;  %v6955_v47 = vld [vmem:[%s8930_s1 + $0xfc4] ss:$16 sps:$4 sm:$0xff]   ;;  %v6958_v6 = vld [vmem:[%s8930_s1 + $0xfcc] ss:$16 sps:$4 sm:$0xff]  }
 0x1ea   : > { %v2413_v9 = vadd.f32 %v2261_v53, %v8307_v41  ;;  %v2263_v21 = vpop.f32.mrb[33].mxu0  ;;  %v2397_v28 = vpop.f32.mrb[29].mxu1  ;;  %v2443_v44 = vrot.slane %v2395_v17, 2  ;;  %v6953_v40 = vld [vmem:[%s8930_s1 + $0xfc0] ss:$16 sps:$4 sm:$0xff]  }
 0x1eb   : > { %v2423_v30 = vrot.slane %v2263_v21, 1  ;;  %v2265_v32 = vpop.f32.mrb[34].mxu0  ;;  %v2399_v36 = vpop.f32.mrb[30].mxu1  ;;  %4432 = vmatpush1.bf16.msra.mxu0 %v6923_v24  ;;  %4566 = vmatpush1.bf16.msra.mxu1 %v6926_v7  ;;  %v8756_v38 = vadd.f32 %v2462_v11, %v2452_v19  ;;  %v2463_v50 = vrot.slane %v2397_v28, 3  ;;  %v6956_v24 = vld [vmem:[%s8930_s1 + $0xfc8] ss:$16 sps:$4 sm:$0xff]  }
 0x1ec   : > { %v2414_v42 = vadd.f32 %v2265_v32, %v8333_v61  ;;  %v2267_v41 = vpop.f32.mrb[35].mxu0  ;;  %v2401_v16 = vpop.f32.mrb[31].mxu1  ;;  %4433 = vmatprep.subr.bf16.mxu0 %v6931_v8  ;;  %4567 = vmatprep.subr.bf16.mxu1 %v6934_v10  ;;  %v2444_v20 = vrot.slane %v2399_v36, 2  ;;  %v6935_v61 = vld [vmem:[%s8930_s1 + $0xf60] ss:$16 sps:$4 sm:$0xff]  }
 0x1ed   : > { %v2433_v48 = vadd.f32 %v2423_v30, %v2413_v9  ;;  %v2424_v49 = vrot.slane %v2267_v41, 1  ;;  %v2464_v56 = vrot.slane %v2401_v16, 3  ;;  %v6961_v7 = vld [vmem:[%s8930_s1 + $0xfe4] ss:$16 sps:$4 sm:$0xff]   ;;  %v6964_v45 = vld [vmem:[%s8930_s1 + $0xfec] ss:$16 sps:$4 sm:$0xff]  }
 0x1ee   : > { %v6959_v8 = vld [vmem:[%s8930_s1 + $0xfe0] ss:$16 sps:$4 sm:$0xff]   ;;  %v6962_v10 = vld [vmem:[%s8930_s1 + $0xfe8] ss:$16 sps:$4 sm:$0xff]  }
 0x1ef   : > { %v2434_v51 = vadd.f32 %v2424_v49, %v2414_v42  ;;  %4434 = vmatpush1.bf16.msra.mxu0 %v6929_v29  ;;  %4568 = vmatpush1.bf16.msra.mxu1 %v6932_v37  ;;  %v2453_v46 = vadd.f32 %v2443_v44, %v2433_v48 }
 0x1f0   : > { %4435 = vmatprep.subr.bf16.mxu0 %v6937_v43  ;;  %4569 = vmatprep.subr.bf16.mxu1 %v6940_v22 }
 0x1f1   : > { %v2454_v55 = vadd.f32 %v2444_v20, %v2434_v51  ;;  %v2271_v58 = vpop.f32.mrb[40].mxu0  ;;  %v2405_v23 = vpop.f32.mrb[36].mxu1  ;;  %v8777_v27 = vadd.f32 %v2463_v50, %v2453_v46 }
 0x1f2   : > { %v2272_v59 = vpop.f32.mrb[41].mxu0  ;;  %v2406_v62 = vpop.f32.mrb[37].mxu1 }
 0x1f3   : > { %v8779_v39 = vadd.f32 %v2464_v56, %v2454_v55  ;;  %4436 = vmatpush1.bf16.msra.mxu0 %v6935_v61  ;;  %4570 = vmatpush1.bf16.msra.mxu1 %v6938_v14  ;;  %v2273_v15 = vpop.f32.mrb[42].mxu0  ;;  %v2407_v25 = vpop.f32.mrb[38].mxu1 }
 0x1f4   : > { %4437 = vmatprep.subr.bf16.mxu0 %v6943_v54  ;;  %4571 = vmatprep.subr.bf16.mxu1 %v6946_v13  ;;  %v2274_v60 = vpop.f32.mrb[43].mxu0  ;;  %v2408_v4 = vpop.f32.mrb[39].mxu1 }
 0x1f7   : > { %4438 = vmatpush1.bf16.msra.mxu0 %v6941_v63  ;;  %4572 = vmatpush1.bf16.msra.mxu1 %v6944_v31 }
 0x1f8   : > { %4439 = vmatprep.subr.bf16.mxu0 %v6949_v1  ;;  %4573 = vmatprep.subr.bf16.mxu1 %v6952_v2 }
 0x1fb   : > { %4440 = vmatpush1.bf16.msra.mxu0 %v6947_v3  ;;  %4574 = vmatpush1.bf16.msra.mxu1 %v6950_v35 }
 0x1fc   : > { %4441 = vmatprep.subr.bf16.mxu0 %v6955_v47  ;;  %4575 = vmatprep.subr.bf16.mxu1 %v6958_v6 }
 0x1ff   : > { %4442 = vmatpush1.bf16.msra.mxu0 %v6953_v40  ;;  %4576 = vmatpush1.bf16.msra.mxu1 %v6956_v24 }
 0x200   : > { %4443 = vmatprep.subr.bf16.mxu0 %v6961_v7  ;;  %4577 = vmatprep.subr.bf16.mxu1 %v6964_v45 }
 0x203   : > { %4444 = vmatpush1.bf16.msra.mxu0 %v6959_v8  ;;  %4578 = vmatpush1.bf16.msra.mxu1 %v6962_v10 }
 0x206   : > { %4446 = vmatmul.mubr.bf16.vlgmr.msra.gmra.mrb[84].mxu0 %v8390_v26  ;;  %4580 = vmatmul.mubr.bf16.vlgmr.msra.gmra.mrb[76].mxu1 %v8390_v26 }
 0x207   : > { %4451 = vmatprep.mubr.bf16.mxu0 %v8407_v34  ;;  %4585 = vmatprep.mubr.bf16.mxu1 %v8407_v34 }
 0x20e   : > { %4452 = vmatmul.mubr.bf16.gmra.mrb[72].mxu0 %v8424_v12  ;;  %4586 = vmatmul.mubr.bf16.gmra.mrb[64].mxu1 %v8424_v12 }
 0x20f   : > { %4459 = vmatprep.mubr.bf16.mxu0 %v8441_v5  ;;  %4593 = vmatprep.mubr.bf16.mxu1 %v8441_v5 }
 0x216   : > { %4460 = vmatmul.mubr.bf16.gmra.mrb[76].mxu0 %v8458_v52  ;;  %4594 = vmatmul.mubr.bf16.gmra.mrb[68].mxu1 %v8458_v52 }
 0x217   : > { %4469 = vmatprep.mubr.bf16.mxu0 %v8475_v57  ;;  %4603 = vmatprep.mubr.bf16.mxu1 %v8475_v57 }
 0x219   : > { %v3278_v26 = vpop.f32.mrb[44].mxu0  ;;  %v3412_v11 = vpop.f32.mrb[40].mxu1 }
 0x21a   : > { %v3279_v53 = vpop.f32.mrb[45].mxu0  ;;  %v3413_v34 = vpop.f32.mrb[41].mxu1 }
 0x21b   : > { %v3280_v17 = vpop.f32.mrb[46].mxu0  ;;  %v3414_v19 = vpop.f32.mrb[42].mxu1 }
 0x21c   : > { %v3281_v9 = vpop.f32.mrb[47].mxu0  ;;  %v3415_v12 = vpop.f32.mrb[43].mxu1 }
 0x21e   : > { %4470 = vmatmul.mubr.bf16.gmra.mrb[80].mxu0 %v8492_v33  ;;  %4604 = vmatmul.mubr.bf16.gmra.mrb[72].mxu1 %v8492_v33 }
 0x231   : > { %v3304_v5 = vpop.f32.mrb[56].mxu0 }
 0x232   : > { %v3306_v21 = vpop.f32.mrb[57].mxu0 }
 0x233   : > { %v3308_v28 = vpop.f32.mrb[58].mxu0 }
 0x234   : > { %v3309_v52 = vpop.f32.mrb[59].mxu0 }
 0x259   : > { %v3345_v29 = vpop.f32.mrb[60].mxu0  ;;  %v3479_v30 = vpop.f32.mrb[56].mxu1 }
 0x25a   : > { %v3346_v32 = vpop.f32.mrb[61].mxu0  ;;  %v3480_v57 = vpop.f32.mrb[57].mxu1 }
 0x25b   : > { %v3347_v36 = vpop.f32.mrb[62].mxu0  ;;  %v3481_v37 = vpop.f32.mrb[58].mxu1 }
 0x25c   : > { %v3348_v42 = vpop.f32.mrb[63].mxu0  ;;  %v3482_v41 = vpop.f32.mrb[59].mxu1 }
 0x261   : > { %v3351_v16 = vpop.f32.mrb[48].mxu0  ;;  %v3485_v43 = vpop.f32.mrb[44].mxu1 }
 0x262   : > { %v3512_v22 = vadd.f32 %v3351_v16, %v8726_v0  ;;  %v3353_v44 = vpop.f32.mrb[49].mxu0  ;;  %v3487_v48 = vpop.f32.mrb[45].mxu1  ;;  %v3542_v14 = vrot.slane %v3485_v43, 2 }
 0x263   : > { %v3522_v49 = vrot.slane %v3353_v44, 1  ;;  %v3355_v33 = vpop.f32.mrb[50].mxu0  ;;  %v3489_v50 = vpop.f32.mrb[46].mxu1  ;;  %v3562_v13 = vrot.slane %v3487_v48, 3 }
 0x264   : > { %v3513_v20 = vadd.f32 %v3355_v33, %v8747_v18  ;;  %v3357_v51 = vpop.f32.mrb[51].mxu0  ;;  %v3491_v61 = vpop.f32.mrb[47].mxu1  ;;  %v3543_v55 = vrot.slane %v3489_v50, 2 }
 0x265   : > { %v3532_v46 = vadd.f32 %v3522_v49, %v3512_v22  ;;  %v3523_v54 = vrot.slane %v3357_v51, 1  ;;  %v3563_v23 = vrot.slane %v3491_v61, 3 }
 0x267   : > { %v3533_v56 = vadd.f32 %v3523_v54, %v3513_v20  ;;  %v3552_v58 = vadd.f32 %v3542_v14, %v3532_v46 }
 0x269   : > { %v3361_v59 = vpop.f32.mrb[52].mxu0  ;;  %v3495_v62 = vpop.f32.mrb[48].mxu1  ;;  %v3572_v0 = vadd.f32 %v3562_v13, %v3552_v58  ;;  %v3553_v63 = vadd.f32 %v3543_v55, %v3533_v56 }
 0x26a   : > { %v3514_v31 = vadd.f32 %v3361_v59, %v8756_v38  ;;  %v3363_v15 = vpop.f32.mrb[53].mxu0  ;;  %v3497_v25 = vpop.f32.mrb[49].mxu1  ;;  %v3544_v47 = vrot.slane %v3495_v62, 2 }
 0x26b   : > { %v3524_v1 = vrot.slane %v3363_v15, 1  ;;  %v3365_v18 = vpop.f32.mrb[54].mxu0  ;;  %v3499_v2 = vpop.f32.mrb[50].mxu1  ;;  %v8840_v60 = vadd.f32 %v3563_v23, %v3553_v63  ;;  %v3564_v24 = vrot.slane %v3497_v25, 3 }
 0x26c   : > { %v3515_v4 = vadd.f32 %v3365_v18, %v8777_v27  ;;  %v3367_v3 = vpop.f32.mrb[55].mxu0  ;;  %v3501_v35 = vpop.f32.mrb[51].mxu1  ;;  %v3545_v7 = vrot.slane %v3499_v2, 2 }
 0x26d   : > { %v3534_v6 = vadd.f32 %v3524_v1, %v3514_v31  ;;  %v3525_v40 = vrot.slane %v3367_v3, 1  ;;  %v3565_v10 = vrot.slane %v3501_v35, 3  ;;  %v6067_v3 = vld [vmem:[%s8931_s2] ss:$0 sm:$0xff] }
 0x26f   : > { %v3535_v45 = vadd.f32 %v3525_v40, %v3515_v4  ;;  %v3554_v8 = vadd.f32 %v3544_v47, %v3534_v6 }
 0x271   : > { %v3371_v38 = vpop.f32.mrb[64].mxu0  ;;  %v3505_v26 = vpop.f32.mrb[52].mxu1  ;;  %v3574_v11 = vadd.f32 %v3564_v24, %v3554_v8  ;;  %v3555_v53 = vadd.f32 %v3545_v7, %v3535_v45 }
 0x272   : > { %v3372_v34 = vadd.f32 %v3371_v38, %v3304_v5  ;;  %v3373_v17 = vpop.f32.mrb[65].mxu0  ;;  %v3507_v19 = vpop.f32.mrb[53].mxu1  ;;  %v3546_v57 = vrot.slane %v3505_v26, 2 }
 0x273   : > { %v3374_v9 = vadd.f32 %v3373_v17, %v3306_v21  ;;  %v3509_v12 = vpop.f32.mrb[54].mxu1  ;;  %v3375_v27 = vpop.f32.mrb[66].mxu0  ;;  %v8843_v28 = vadd.f32 %v3565_v10, %v3555_v53  ;;  %v3566_v37 = vrot.slane %v3507_v19, 3 }
 0x274   : > { %v3516_v52 = vadd.f32 %v3372_v34, %v8779_v39  ;;  %v3510_v29 = vpop.f32.mrb[55].mxu1  ;;  %v3376_v30 = vpop.f32.mrb[67].mxu0 }
 0x275   : > { %v3526_v32 = vrot.slane %v3374_v9, 1 }
 0x277   : > { %v3536_v36 = vadd.f32 %v3526_v32, %v3516_v52 }
 0x279   : > { %v3556_v42 = vadd.f32 %v3546_v57, %v3536_v36 }
 0x27b   : > { %v8846_v41 = vadd.f32 %v3566_v37, %v3556_v42 }
 0x299   : > { %v4380_v16 = vpop.f32.mrb[68].mxu0  ;;  %v4514_v5 = vpop.f32.mrb[60].mxu1 }
 0x29a   : > { %v4381_v43 = vpop.f32.mrb[69].mxu0  ;;  %v4515_v22 = vpop.f32.mrb[61].mxu1 }
 0x29b   : > { %v4382_v21 = vpop.f32.mrb[70].mxu0  ;;  %v4516_v44 = vpop.f32.mrb[62].mxu1 }
 0x29c   : > { %v4383_v48 = vpop.f32.mrb[71].mxu0  ;;  %v4517_v49 = vpop.f32.mrb[63].mxu1 }
 0x2d9   : > { %v4447_v33 = vpop.f32.mrb[84].mxu0  ;;  %v4581_v50 = vpop.f32.mrb[76].mxu1 }
 0x2da   : > { %v4448_v39 = vpop.f32.mrb[85].mxu0  ;;  %v4582_v20 = vpop.f32.mrb[77].mxu1 }
 0x2db   : > { %v4449_v51 = vpop.f32.mrb[86].mxu0  ;;  %v4583_v61 = vpop.f32.mrb[78].mxu1 }
 0x2dc   : > { %v4450_v14 = vpop.f32.mrb[87].mxu0  ;;  %v4584_v46 = vpop.f32.mrb[79].mxu1 }
 0x2e1   : > { %v4453_v54 = vpop.f32.mrb[72].mxu0  ;;  %v4587_v13 = vpop.f32.mrb[64].mxu1 }
 0x2e2   : > { %v4454_v55 = vpop.f32.mrb[73].mxu0  ;;  %v4588_v56 = vpop.f32.mrb[65].mxu1 }
 0x2e3   : > { %v4455_v58 = vpop.f32.mrb[74].mxu0  ;;  %v4589_v23 = vpop.f32.mrb[66].mxu1 }
 0x2e4   : > { %v4614_v59 = vadd.f32 %v4455_v58, %v3572_v0  ;;  %v4457_v62 = vpop.f32.mrb[75].mxu0  ;;  %v4591_v63 = vpop.f32.mrb[67].mxu1  ;;  %v4644_v15 = vrot.slane %v4589_v23, 2 }
 0x2e5   : > { %v4624_v31 = vrot.slane %v4457_v62, 1  ;;  %v4664_v18 = vrot.slane %v4591_v63, 3 }
 0x2e7   : > { %v4634_v25 = vadd.f32 %v4624_v31, %v4614_v59 }
 0x2e9   : > { %v4654_v1 = vadd.f32 %v4644_v15, %v4634_v25  ;;  %v4461_v2 = vpop.f32.mrb[76].mxu0  ;;  %v4595_v4 = vpop.f32.mrb[68].mxu1 }
 0x2ea   : > { %v4615_v35 = vadd.f32 %v4461_v2, %v8840_v60  ;;  %v4463_v47 = vpop.f32.mrb[77].mxu0  ;;  %v4597_v6 = vpop.f32.mrb[69].mxu1  ;;  %v4645_v26 = vrot.slane %v4595_v4, 2  ;;  %v4730_v2 = vlaneseq }
 0x2eb   : > { %v4674_v40 = vadd.f32 %v4664_v18, %v4654_v1  ;;  %v4625_v24 = vrot.slane %v4463_v47, 1  ;;  %v4465_v0 = vpop.f32.mrb[78].mxu0  ;;  %v4599_v7 = vpop.f32.mrb[70].mxu1  ;;  %v4665_v17 = vrot.slane %v4597_v6, 3  ;;  %v7009_v1 = vmov 1966171168  }
 0x2ec   : > { %v4616_v45 = vadd.f32 %v4465_v0, %v3574_v11  ;;  %v4467_v8 = vpop.f32.mrb[79].mxu0  ;;  %v4601_v10 = vpop.f32.mrb[71].mxu1  ;;  %v4646_v12 = vrot.slane %v4599_v7, 2  ;;  %v4728_v18 = vunpack.c.l.s4 %v7009_v1 }
 0x2ed   : > { %v8852_v38 = vadd.f32 %v6067_v3, %v4674_v40  ;;  %v4635_v53 = vadd.f32 %v4625_v24, %v4615_v35  ;;  %v4626_v34 = vrot.slane %v4467_v8, 1  ;;  %v4666_v30 = vrot.slane %v4601_v10, 3 }
 0x2ee   : > { %v4729_v40 = vunpack.c.0.s8 %v4728_v18  ;;  %v4731_v24 = vshrl.u32 %v4730_v2, 7 }
 0x2ef   : > { %v4691_v19 = vsub.f32 0.0, %v8852_v38  ;;  %v4655_v9 = vadd.f32 %v4645_v26, %v4635_v53  ;;  %v4636_v60 = vadd.f32 %v4626_v34, %v4616_v45 }
 0x2f1   : > { %v4696_v27 = vmul.f32 1.442695, %v4691_v19  ;;  %v4675_v52 = vadd.f32 %v4665_v17, %v4655_v9  ;;  %v4656_v29 = vadd.f32 %v4646_v12, %v4636_v60  ;;  %v4471_v32 = vpop.f32.mrb[80].mxu0  ;;  %v4605_v57 = vpop.f32.mrb[72].mxu1 }
 0x2f2   : > { %v4617_v11 = vadd.f32 %v4471_v32, %v8843_v28  ;;  %v4473_v36 = vpop.f32.mrb[81].mxu0  ;;  %v4607_v37 = vpop.f32.mrb[73].mxu1  ;;  %v4647_v21 = vrot.slane %v4605_v57, 2 }
 0x2f3   : > { %6965 = vpow2.f32 %v4696_v27  ;;  %v8856_v42 = vadd.f32 %v6067_v3, %v4675_v52  ;;  %v4676_v16 = vadd.f32 %v4666_v30, %v4656_v29  ;;  %v4627_v5 = vrot.slane %v4473_v36, 1  ;;  %v4475_v43 = vpop.f32.mrb[82].mxu0  ;;  %v4609_v22 = vpop.f32.mrb[74].mxu1 }
 0x2f4   : > { %v4618_v44 = vadd.f32 %v4475_v43, %v8846_v41  ;;  %v4477_v48 = vpop.f32.mrb[83].mxu0  ;;  %v4611_v49 = vpop.f32.mrb[75].mxu1  ;;  %v4667_v28 = vrot.slane %v4607_v37, 3  ;;  %v4648_v51 = vrot.slane %v4609_v22, 2 }
 0x2f5   : > { %v4692_v33 = vsub.f32 0.0, %v8856_v42  ;;  %v4688_v50 = vadd.f32 %v6067_v3, %v4676_v16  ;;  %v4637_v39 = vadd.f32 %v4627_v5, %v4617_v11  ;;  %v4628_v20 = vrot.slane %v4477_v48, 1 }
 0x2f6   : > { %v4668_v13 = vrot.slane %v4611_v49, 3 }
 0x2f7   : > { %v4698_v61 = vmul.f32 1.442695, %v4692_v33  ;;  %v4693_v14 = vsub.f32 0.0, %v4688_v50  ;;  %v4657_v46 = vadd.f32 %v4647_v21, %v4637_v39  ;;  %v4638_v54 = vadd.f32 %v4628_v20, %v4618_v44 }
 0x2f9   : > { %6967 = vpow2.f32 %v4698_v61  ;;  %v4700_v55 = vmul.f32 1.442695, %v4693_v14  ;;  %v4677_v56 = vadd.f32 %v4667_v28, %v4657_v46  ;;  %v4658_v58 = vadd.f32 %v4648_v51, %v4638_v54 }
 0x2fb   : > { %6969 = vpow2.f32 %v4700_v55  ;;  %v8860_v41 = vadd.f32 %v6067_v3, %v4677_v56  ;;  %v4678_v23 = vadd.f32 %v4668_v13, %v4658_v58 }
 0x2fd   : > { %v6966_v59 = vpop.eup %6965  ;;  %v4694_v62 = vsub.f32 0.0, %v8860_v41  ;;  %v8863_v63 = vadd.f32 %v6067_v3, %v4678_v23  ;;  %v8866_v3 = vsub.s32 %v4729_v40, %v4731_v24 }
 0x2fe   : > { %v4706_v31 = vadd.f32 1.0, %v6966_v59 }
 0x2ff   : > { %v4702_v15 = vmul.f32 1.442695, %v4694_v62  ;;  %v4695_v25 = vsub.f32 0.0, %v8863_v63 }
 0x300   : > { %6971 = vrcp.f32 %v4706_v31 }
 0x301   : > { %6973 = vpow2.f32 %v4702_v15  ;;  %v4704_v4 = vmul.f32 1.442695, %v4695_v25 }
 0x303   : > { %v6968_v35 = vpop.eup %6967  ;;  %6975 = vpow2.f32 %v4704_v4 }
 0x304   : > { %v4707_v47 = vadd.f32 1.0, %v6968_v35 }
 0x305   : > { %v6970_v6 = vpop.eup %6969 }
 0x306   : > { %6977 = vrcp.f32 %v4707_v47  ;;  %v4708_v0 = vadd.f32 1.0, %v6970_v6 }
 0x308   : > { %6979 = vrcp.f32 %v4708_v0 }
 0x30a   : > { %v6972_v7 = vpop.eup %6971 }
 0x30b   : > { %v6974_v45 = vpop.eup %6973  ;;  %v4716_v8 = vmul.f32 %v6972_v7, %v8852_v38 }
 0x30c   : > { %v4709_v10 = vadd.f32 1.0, %v6974_v45 }
 0x30d   : > { %v6976_v26 = vpop.eup %6975  ;;  %v4733_v53 = vrot.slane %v4716_v8, %v8866_v3  ;;  %v4726_v34 = vcombine.high %v4716_v8, %v4716_v8 }
 0x30e   : > { %6981 = vrcp.f32 %v4709_v10  ;;  %v4710_v17 = vadd.f32 1.0, %v6976_v26 }
 0x30f   : > { %v4741_v19 = vcombine.high %v4733_v53, %v4733_v53  ;;  %v4748_v12 = vrot.slane %v4733_v53, %v8866_v3  ;;  %v4740_v38 = vrot.slane %v4726_v34, %v8866_v3 }
 0x310   : > { %v6978_v9 = vpop.eup %6977  ;;  %6983 = vrcp.f32 %v4710_v17 }
 0x311   : > { %v4762_v60 = vrot.slane %v4741_v19, %v8866_v3  ;;  %v4717_v27 = vmul.f32 %v6978_v9, %v8856_v42  ;;  %v4755_v43 = vrot.slane %v4740_v38, %v8866_v3 }
 0x312   : > { %v6980_v52 = vpop.eup %6979 }
 0x313   : > { %v4921_v29 = vcombine.low %v4748_v12, %v4762_v60  ;;  %v6068_v30 = vcombine.high %v4748_v12, %v4762_v60  ;;  %v4765_v32 = vcombine.high %v4717_v27, %v4717_v27  ;;  %v4772_v57 = vrot.slane %v4717_v27, %v8866_v3 }
 0x314   : > { %v4718_v11 = vmul.f32 %v6980_v52, %v4688_v50 }
 0x315   : > { %v4931_v36 = vrot.slane %v4921_v29, %v8866_v3  ;;  %v4938_v37 = vrot.slane %v6068_v30, %v8866_v3  ;;  %v4779_v16 = vrot.slane %v4765_v32, %v8866_v3  ;;  %v4780_v5 = vcombine.high %v4772_v57, %v4772_v57 }
 0x316   : > { %v4787_v42 = vrot.slane %v4772_v57, %v8866_v3  ;;  %v4804_v22 = vcombine.high %v4718_v11, %v4718_v11  ;;  %v4811_v21 = vrot.slane %v4718_v11, %v8866_v3 }
 0x317   : > { %v4801_v44 = vrot.slane %v4780_v5, %v8866_v3  ;;  %v4953_v20 = vcombine.low %v4931_v36, %v4938_v37  ;;  %v4794_v28 = vrot.slane %v4779_v16, %v8866_v3 }
 0x318   : > { %v6982_v48 = vpop.eup %6981  ;;  %v4802_v49 = vcombine.high %v4787_v42, %v4787_v42  ;;  %v4923_v33 = vcombine.low %v4755_v43, %v4787_v42  ;;  %v4818_v50 = vrot.slane %v4804_v22, %v8866_v3  ;;  %v4819_v39 = vcombine.high %v4811_v21, %v4811_v21 }
 0x319   : > { %v4803_v51 = vcombine.high %v4801_v44, %v4801_v44  ;;  %v4719_v61 = vmul.f32 %v6982_v48, %v8860_v41  ;;  %v4826_v13 = vrot.slane %v4811_v21, %v8866_v3  ;;  %v4961_v4 = vrot.slane %v4953_v20, %v8866_v3 }
 0x31a   : > { %v6984_v14 = vpop.eup %6983  ;;  %v4924_v46 = vcombine.low %v4801_v44, %v4802_v49  ;;  %v4945_v54 = vrot.slane %v4923_v33, %v8866_v3  ;;  %v4840_v55 = vrot.slane %v4819_v39, %v8866_v3  ;;  %v4833_v62 = vrot.slane %v4818_v50, %v8866_v3 }
 0x31b   : > { %v4970_v56 = vcombine.low %v4803_v51, %v4794_v28  ;;  %v4843_v58 = vcombine.high %v4719_v61, %v4719_v61  ;;  %v4850_v23 = vrot.slane %v4719_v61, %v8866_v3  ;;  %v4720_v59 = vmul.f32 %v6984_v14, %v8863_v63 }
 0x31c   : > { %v4952_v41 = vrot.slane %v4924_v46, %v8866_v3  ;;  %v4971_v31 = vcombine.low %v4826_v13, %v4840_v55  ;;  %v6069_v15 = vcombine.high %v4826_v13, %v4840_v55 }
 0x31d   : > { %v4980_v25 = vrot.slane %v4970_v56, %v8866_v3  ;;  %v4857_v1 = vrot.slane %v4843_v58, %v8866_v3  ;;  %v4858_v18 = vcombine.high %v4850_v23, %v4850_v23  ;;  %v4865_v2 = vrot.slane %v4850_v23, %v8866_v3 }
 0x31e   : > { %v4954_v35 = vcombine.low %v4945_v54, %v4952_v41  ;;  %v4987_v47 = vrot.slane %v4971_v31, %v8866_v3  ;;  %v4882_v63 = vcombine.high %v4720_v59, %v4720_v59  ;;  %v4994_v6 = vrot.slane %v6069_v15, %v8866_v3 }
 0x31f   : > { %v4879_v40 = vrot.slane %v4858_v18, %v8866_v3  ;;  %v4880_v24 = vcombine.high %v4865_v2, %v4865_v2  ;;  %v4973_v0 = vcombine.low %v4833_v62, %v4865_v2  ;;  %v4889_v8 = vrot.slane %v4720_v59, %v8866_v3 }
 0x320   : > { %v4968_v7 = vrot.slane %v4954_v35, %v8866_v3  ;;  %v5002_v45 = vcombine.low %v4980_v25, %v4987_v47  ;;  %v4896_v10 = vrot.slane %v4882_v63, %v8866_v3  ;;  %v4872_v26 = vrot.slane %v4857_v1, %v8866_v3 }
 0x321   : > { %v4881_v53 = vcombine.high %v4879_v40, %v4879_v40  ;;  %v5001_v34 = vrot.slane %v4973_v0, %v8866_v3  ;;  %v5019_v17 = vcombine.low %v4879_v40, %v4880_v24  ;;  %v4897_v9 = vcombine.high %v4889_v8, %v4889_v8 }
 0x322   : > { %v4969_v19 = vcombine.low %v4961_v4, %v4968_v7  ;;  %v4911_v27 = vrot.slane %v4896_v10, %v8866_v3  ;;  %v5010_v52 = vrot.slane %v5002_v45, %v8866_v3  ;;  %v4904_v38 = vrot.slane %v4889_v8, %v8866_v3 }
 0x323   : > { %v5003_v12 = vcombine.low %v4994_v6, %v5001_v34  ;;  %v5020_v60 = vcombine.low %v4881_v53, %v4872_v26  ;;  %v4918_v29 = vrot.slane %v4897_v9, %v8866_v3  ;;  %v5029_v32 = vrot.slane %v5019_v17, %v8866_v3 }
 0x324   : > { %5086 = vst [vmem:[%s175_s28] sm:$0xff] %v4969_v19  ;;  %v5074_v11 = vrot.slane %v4911_v27, %v8866_v3 }
 0x325   : > { %v5017_v30 = vrot.slane %v5003_v12, %v8866_v3  ;;  %v5036_v57 = vrot.slane %v5020_v60, %v8866_v3  ;;  %v5021_v36 = vcombine.low %v4904_v38, %v4918_v29  ;;  %v6070_v37 = vcombine.high %v4904_v38, %v4918_v29 }
 0x326   : > { %6071 = vst.sshfl [vmem:[%s175_s28 + $0x18] sm:$0x1 pattern:$0x73625140] %v5074_v11 }
 0x327   : > { %v5018_v16 = vcombine.low %v5010_v52, %v5017_v30  ;;  %v5051_v5 = vcombine.low %v5029_v32, %v5036_v57  ;;  %v5043_v43 = vrot.slane %v5021_v36, %v8866_v3  ;;  %v5050_v42 = vrot.slane %v6070_v37, %v8866_v3 }
 0x329   : > { %5087 = vst [vmem:[%s175_s28 + $0x8] sm:$0xff] %v5018_v16  ;;  %v5059_v22 = vrot.slane %v5051_v5, %v8866_v3  ;;  %v5052_v21 = vcombine.low %v5043_v43, %v5050_v42 }
 0x32b   : > { %v5066_v44 = vrot.slane %v5052_v21, %v8866_v3 }
 0x32d   : > { %v5067_v48 = vcombine.low %v5059_v22, %v5066_v44 }
 0x32f   : > { %5088 = vst [vmem:[%s175_s28 + $0x10] sm:$0xff] %v5067_v48 }
 0x330 PF: > { %s13_s12 = sadd.s32 1, %s7007_s12  }
 0x331   : > { %p10_p5 = scmp.ge.s32.totalorder %s13_s12, 4  }
 0x333   :  { %12 = sbr.rel (!%p10_p5) target bundleno = 1 (0x1), region = 65 }

</bundles_post_ra>
